<compile_context>
chip_gen: v7x
topology: tpu7x:2x2x1
jax: 0.10.0
libtpu: 0.0.40
codegen_flags: <defaults>
</compile_context>

<pallas_src>
import functools

import jax
import jax.numpy as jnp
import numpy as np
from jax.experimental import pallas as pl
from jax.experimental.pallas import tpu as pltpu


# ---------------------------------------------------------------------------
# Small helpers
# ---------------------------------------------------------------------------
def _round_up(v, m):
    return ((v + m - 1) // m) * m


def _vmem_capacity_bytes():
    # 128 MiB on v5e/v6e, 64 MiB per TensorCore on v7x; conservative fallback.
    try:
        return int(pltpu.get_tpu_info().vmem_capacity_bytes)
    except Exception:
        return 64 * 1024 * 1024


def _default_act_dtype(matmul_dtype):
    """GELU compute dtype: bf16 on v6e/v7x (bf16 VPU/EUP), f32 on v5e / f32 runs."""
    if jnp.dtype(matmul_dtype) == jnp.dtype(jnp.float32):
        return jnp.float32
    try:
        kind = jax.devices()[0].device_kind.lower()
    except Exception:
        kind = ""
    if ("v5 lite" in kind) or ("v5e" in kind) or ("v5litepod" in kind):
        return jnp.float32
    return jnp.bfloat16


# ---------------------------------------------------------------------------
# Fused kernel: (im2col'ed conv3x3) matmul -> bias -> GELU -> linear -> bias
# ---------------------------------------------------------------------------
def _mlp_cnn_kernel(xc_ref, w1_ref, b1_ref, w2_ref, b2_ref, o_ref, *, act_dtype):
    # xc_ref: (tile_m, 9*Cin)   im2col rows (one row per output pixel)
    # w1_ref: (9*Cin, Hid)      conv taps flattened (dh, dw, cin) row-major
    # b1_ref: (1, Hid)          f32
    # w2_ref: (Hid, Cout)
    # b2_ref: (1, Cout)         f32
    # o_ref : (tile_m, Cout)
    # fc1: the whole 3x3 conv is ONE MXU matmul with f32 accumulation.
    h = jnp.dot(xc_ref[...], w1_ref[...], preferred_element_type=jnp.float32)
    h = h + b1_ref[...]

    # GELU (tanh approximation; tanh runs on the EUP slot).
    # TODO(synk): PyTorch nn.GELU() default is the exact erf form; the tanh
    # approximation is used here because it has a guaranteed Mosaic lowering.
    h = h.astype(act_dtype)
    h = 0.5 * h * (1.0 + jnp.tanh(0.7978845608028654
                                  * (h + 0.044715 * (h * h * h))))

    # fc2: hidden never leaves VMEM; MXU dot in the weights' dtype, f32 accum.
    y = jnp.dot(h.astype(w2_ref.dtype), w2_ref[...],
                preferred_element_type=jnp.float32)
    o_ref[...] = (y + b2_ref[...]).astype(o_ref.dtype)


# ---------------------------------------------------------------------------
# Wrapper
# ---------------------------------------------------------------------------
def mlp_cnn_pallas(x, params, *, matmul_dtype=jnp.bfloat16, act_dtype=None,
                   single_buffer_weights=True):
    """Forward of Mlp_cnn.  x: (B, T, H, W, Cin) channels-last.

    Params are stored pre-transposed relative to PyTorch:
      w1: (3, 3, Cin, Hid)  == fc1.weight (OIHW) transposed to HWIO
      w2: (Hid, Cout)       == fc2.weight.T
    Dropout (p=0.0 default) is an identity and is omitted.
    """
    # TODO(synk): grouped conv (n_groups > 1) not implemented; module default
    # groups=1 is what is implemented here.
    B, T, H, W, Cin = x.shape
    w1, b1, w2, b2 = params["w1"], params["b1"], params["w2"], params["b2"]
    Hid = w1.shape[3]
    Cout = w2.shape[1]
    N = B * T
    M_total = N * H * W
    K = 9 * Cin

    matmul_dtype = jnp.dtype(matmul_dtype)
    if act_dtype is None:
        act_dtype = _default_act_dtype(matmul_dtype)

    # ---- im2col in the wrapper (XLA) --------------------------------------
    # Zero-pad once, gather the 9 taps onto the lane axis; the conv then is a
    # single K = 9*Cin matmul in the kernel (lane-dense LHS, MXU-internal
    # accumulation, no strided tap slices).
    x_img = x.reshape(N, H, W, Cin)
    x_pad = jnp.pad(x_img, ((0, 0), (1, 1), (1, 1), (0, 0)))
    taps = [x_pad[:, dh:dh + H, dw:dw + W, :]
            for dh in range(3) for dw in range(3)]
    x_cols = jnp.concatenate(taps, axis=-1).reshape(M_total, K).astype(matmul_dtype)

    w1_mat = w1.reshape(K, Hid).astype(matmul_dtype)       # (dh,dw,cin) row-major
    w2_mat = w2.astype(matmul_dtype)
    b1_row = b1.reshape(1, Hid).astype(jnp.float32)
    b2_row = b2.reshape(1, Cout).astype(jnp.float32)

    # ---- generation-aware tile sizing --------------------------------------
    vmem_cap = _vmem_capacity_bytes()                       # 128 MiB v5e/v6e, 64 MiB v7x
    vmem_limit = min((vmem_cap * 3) // 4, 96 * 1024 * 1024)
    act_budget = vmem_limit // 2                            # headroom for compiler scratch

    in_itm = matmul_dtype.itemsize
    out_itm = jnp.dtype(x.dtype).itemsize
    # Per-row VMEM with lane padding to 128 (what actually lands in VMEM).
    in_row = _round_up(K, 128) * in_itm
    out_row = _round_up(Cout, 128) * out_itm
    mid_row = 3 * _round_up(Hid, 128) * 4                   # live f32 h / GELU copies
    w_buffers = 1 if single_buffer_weights else 2
    w_bytes = w_buffers * (_round_up(K, 16) * _round_up(Hid, 128) * in_itm
                           + _round_up(Hid, 16) * _round_up(Cout, 128) * in_itm
                           + 2 * 8 * 128 * 4)                # biases (padded)
    bytes_per_row = 2 * (in_row + out_row) + mid_row

    budget_rows = max(16, (act_budget - w_bytes) // bytes_per_row)
    # Keep >= 4 grid steps so v7x's two TensorCores both get work and the
    # input/output DMAs pipeline with compute on every generation.
    min_steps_rows = _round_up(pl.cdiv(M_total, 4), 16)
    tile_m = min(budget_rows, min_steps_rows, M_total)
    if tile_m < M_total:
        tile_m = max(16, (tile_m // 16) * 16)                # block dim multiple of 16
    tile_m = min(tile_m, M_total)
    grid = (pl.cdiv(M_total, tile_m),)
    # TODO(synk): for production shapes where even a 16-row block's (16, Hid)
    # f32 activation or the (9*Cin, Hid) weight slab cannot fit the budget,
    # add a second "arbitrary" grid axis over Hid with an f32 accumulator in
    # scratch.

    const_kwargs = {}
    if single_buffer_weights and hasattr(pl, "Buffered"):
        # Constant operands: index_map never changes -> no need to double-buffer.
        const_kwargs = dict(pipeline_mode=pl.Buffered(1))

    kernel = functools.partial(_mlp_cnn_kernel, act_dtype=act_dtype)

    out_flat = pl.pallas_call(
        kernel,
        out_shape=jax.ShapeDtypeStruct((M_total, Cout), x.dtype),
        grid=grid,
        in_specs=[
            pl.BlockSpec((tile_m, K), lambda i: (i, 0)),
            pl.BlockSpec((K, Hid), lambda i: (0, 0), **const_kwargs),
            pl.BlockSpec((1, Hid), lambda i: (0, 0), **const_kwargs),
            pl.BlockSpec((Hid, Cout), lambda i: (0, 0), **const_kwargs),
            pl.BlockSpec((1, Cout), lambda i: (0, 0), **const_kwargs),
        ],
        out_specs=pl.BlockSpec((tile_m, Cout), lambda i: (i, 0)),
        compiler_params=pltpu.CompilerParams(
            dimension_semantics=("parallel",),
            vmem_limit_bytes=int(vmem_limit),
        ),
    )(x_cols, w1_mat, b1_row, w2_mat, b2_row)

    return out_flat.reshape(B, T, H, W, Cout)


# ---------------------------------------------------------------------------
# Pure-JAX reference mirroring the PyTorch forward (same GELU formulation).
# ---------------------------------------------------------------------------
def mlp_cnn_reference(x, params):
    B, T, H, W, Cin = x.shape
    w1, b1, w2, b2 = params["w1"], params["b1"], params["w2"], params["b2"]
    x_img = x.reshape(B * T, H, W, Cin)
    h = jax.lax.conv_general_dilated(
        x_img, w1, window_strides=(1, 1), padding=((1, 1), (1, 1)),
        dimension_numbers=("NHWC", "HWIO", "NHWC"),
        precision=jax.lax.Precision.HIGHEST)
    h = h + b1
    h = 0.5 * h * (1.0 + jnp.tanh(0.7978845608028654
                                  * (h + 0.044715 * (h * h * h))))
    y = jnp.dot(h, w2, precision=jax.lax.Precision.HIGHEST) + b2
    return y.reshape(B, T, H, W, w2.shape[1])


# ---------------------------------------------------------------------------
# Main
# ---------------------------------------------------------------------------
if __name__ == "__main__":
    # Small shapes consistent with the module's (B, T, H, W, C) forward.
    B, T, H, W = 2, 4, 8, 8
    Cin, exp_r = 32, 4
    Hid = Cin * exp_r          # hidden_features = in_features * exp_r
    Cout = Cin                 # out_features defaults to in_features

    key = jax.random.PRNGKey(0)
    kx, k1, k2, k3, k4 = jax.random.split(key, 5)
    x = jax.random.normal(kx, (B, T, H, W, Cin), jnp.float32)
    params = {
        "w1": 0.1 * jax.random.normal(k1, (3, 3, Cin, Hid), jnp.float32),  # HWIO
        "b1": 0.1 * jax.random.normal(k2, (Hid,), jnp.float32),
        "w2": 0.1 * jax.random.normal(k3, (Hid, Cout), jnp.float32),       # (in, out)
        "b2": 0.1 * jax.random.normal(k4, (Cout,), jnp.float32),
    }

    ref = np.asarray(mlp_cnn_reference(x, params))

    # Default path: bf16 MXU operands, f32 accumulation.  Fall back to
    # double-buffered weight blocks if this jax build rejects pl.Buffered(1).
    single_buffer = True
    try:
        fwd = jax.jit(functools.partial(mlp_cnn_pallas,
                                        single_buffer_weights=True))
        out = jax.block_until_ready(fwd(x, params))
    except Exception:
        single_buffer = False
        fwd = jax.jit(functools.partial(mlp_cnn_pallas,
                                        single_buffer_weights=False))
        out = jax.block_until_ready(fwd(x, params))
    # bf16 operands vs a float32 HIGHEST-precision reference -> loose tolerance.
    np.testing.assert_allclose(np.asarray(out), ref, rtol=4e-2, atol=4e-2)

    # Same kernel in full f32: tight structural check against the reference.
    fwd32 = jax.jit(functools.partial(mlp_cnn_pallas,
                                      matmul_dtype=jnp.float32,
                                      single_buffer_weights=single_buffer))
    out32 = jax.block_until_ready(fwd32(x, params))
    np.testing.assert_allclose(np.asarray(out32), ref, rtol=2e-3, atol=2e-3)

    print("KERNEL_OK")
</pallas_src>

<mosaic_0001>
module attributes {stable_mosaic.version = 11 : i64} {
  func.func @_mlp_cnn_kernel(%arg0: i32, %arg1: memref<128x288xbf16, #tpu.memory_space<vmem>>, %arg2: memref<288x128xbf16, #tpu.memory_space<vmem>>, %arg3: memref<1x128xf32, #tpu.memory_space<vmem>>, %arg4: memref<128x32xbf16, #tpu.memory_space<vmem>>, %arg5: memref<1x32xf32, #tpu.memory_space<vmem>>, %arg6: memref<128x32xf32, #tpu.memory_space<vmem>>) attributes {dimension_semantics = [#tpu.dimension_semantics<parallel>], iteration_bounds = array<i64: 4>, scalar_prefetch = 0 : i64, scratch_operands = 0 : i64, tpu.core_type = #tpu.core_type<tc>, window_params = [{transform_indices = @transform_0, window_bounds = array<i64: 128, 288>}, {pipeline_mode = #tpu.pipeline_mode<synchronous>, transform_indices = @transform_1, window_bounds = array<i64: 288, 128>}, {pipeline_mode = #tpu.pipeline_mode<synchronous>, transform_indices = @transform_2, window_bounds = array<i64: 1, 128>}, {pipeline_mode = #tpu.pipeline_mode<synchronous>, transform_indices = @transform_3, window_bounds = array<i64: 128, 32>}, {pipeline_mode = #tpu.pipeline_mode<synchronous>, transform_indices = @transform_4, window_bounds = array<i64: 1, 32>}, {transform_indices = @transform_5, window_bounds = array<i64: 128, 32>}]} {
    %c0 = arith.constant 0 : index
    %c0_0 = arith.constant 0 : index
    %0 = vector.load %arg1[%c0, %c0_0] : memref<128x288xbf16, #tpu.memory_space<vmem>>, vector<128x288xbf16>
    %c0_1 = arith.constant 0 : index
    %c0_2 = arith.constant 0 : index
    %1 = vector.load %arg2[%c0_1, %c0_2] : memref<288x128xbf16, #tpu.memory_space<vmem>>, vector<288x128xbf16>
    %cst = arith.constant dense<0.000000e+00> : vector<128x128xf32>
    %2 = tpu.matmul %0, %1, %cst {dimension_numbers = #tpu.dot_dimension_numbers<[1], [0], [0], [1], [0, 0, 1, 1], [], []>} : vector<128x288xbf16>, vector<288x128xbf16>, vector<128x128xf32> -> vector<128x128xf32>
    %c0_3 = arith.constant 0 : index
    %c0_4 = arith.constant 0 : index
    %3 = vector.load %arg3[%c0_3, %c0_4] : memref<1x128xf32, #tpu.memory_space<vmem>>, vector<1x128xf32>
    %4 = vector.broadcast %3 : vector<1x128xf32> to vector<128x128xf32>
    %5 = arith.addf %2, %4 : vector<128x128xf32>
    %6 = arith.truncf %5 : vector<128x128xf32> to vector<128x128xbf16>
    %cst_5 = arith.constant 5.000000e-01 : bf16
    %7 = vector.broadcast %cst_5 : bf16 to vector<128x128xbf16>
    %8 = arith.mulf %7, %6 : vector<128x128xbf16>
    %9 = arith.mulf %6, %6 : vector<128x128xbf16>
    %10 = arith.mulf %9, %6 : vector<128x128xbf16>
    %cst_6 = arith.constant 4.467770e-02 : bf16
    %11 = vector.broadcast %cst_6 : bf16 to vector<128x128xbf16>
    %12 = arith.mulf %11, %10 : vector<128x128xbf16>
    %13 = arith.addf %6, %12 : vector<128x128xbf16>
    %cst_7 = arith.constant 7.968750e-01 : bf16
    %14 = vector.broadcast %cst_7 : bf16 to vector<128x128xbf16>
    %15 = arith.mulf %14, %13 : vector<128x128xbf16>
    %16 = math.tanh %15 : vector<128x128xbf16>
    %cst_8 = arith.constant 1.000000e+00 : bf16
    %17 = vector.broadcast %cst_8 : bf16 to vector<128x128xbf16>
    %18 = arith.addf %17, %16 : vector<128x128xbf16>
    %19 = arith.mulf %8, %18 : vector<128x128xbf16>
    %c0_9 = arith.constant 0 : index
    %c0_10 = arith.constant 0 : index
    %20 = vector.load %arg4[%c0_9, %c0_10] : memref<128x32xbf16, #tpu.memory_space<vmem>>, vector<128x32xbf16>
    %cst_11 = arith.constant dense<0.000000e+00> : vector<128x32xf32>
    %21 = tpu.matmul %19, %20, %cst_11 {dimension_numbers = #tpu.dot_dimension_numbers<[1], [0], [0], [1], [0, 0, 1, 1], [], []>} : vector<128x128xbf16>, vector<128x32xbf16>, vector<128x32xf32> -> vector<128x32xf32>
    %c0_12 = arith.constant 0 : index
    %c0_13 = arith.constant 0 : index
    %22 = vector.load %arg5[%c0_12, %c0_13] : memref<1x32xf32, #tpu.memory_space<vmem>>, vector<1x32xf32>
    %23 = vector.broadcast %22 : vector<1x32xf32> to vector<128x32xf32>
    %24 = arith.addf %21, %23 : vector<128x32xf32>
    %c0_14 = arith.constant 0 : index
    %c0_15 = arith.constant 0 : index
    %25 = vector.load %arg6[%c0_14, %c0_15] : memref<128x32xf32, #tpu.memory_space<vmem>>, vector<128x32xf32>
    tpu.vector_store %arg6[%c0_14, %c0_15], %24 {strides = array<i32>} : memref<128x32xf32, #tpu.memory_space<vmem>>, vector<128x32xf32>,
    return
  }
  func.func @transform_0(%arg0: i32) -> (i32, i32) {
    %c0_i32 = arith.constant 0 : i32
    %c0_i32_0 = arith.constant 0 : i32
    return %arg0, %c0_i32 : i32, i32
  }
  func.func @transform_1(%arg0: i32) -> (i32, i32) {
    %c0_i32 = arith.constant 0 : i32
    %c0_i32_0 = arith.constant 0 : i32
    %c0_i32_1 = arith.constant 0 : i32
    return %c0_i32, %c0_i32_0 : i32, i32
  }
  func.func @transform_2(%arg0: i32) -> (i32, i32) {
    %c0_i32 = arith.constant 0 : i32
    %c0_i32_0 = arith.constant 0 : i32
    %c0_i32_1 = arith.constant 0 : i32
    return %c0_i32, %c0_i32_0 : i32, i32
  }
  func.func @transform_3(%arg0: i32) -> (i32, i32) {
    %c0_i32 = arith.constant 0 : i32
    %c0_i32_0 = arith.constant 0 : i32
    %c0_i32_1 = arith.constant 0 : i32
    return %c0_i32, %c0_i32_0 : i32, i32
  }
  func.func @transform_4(%arg0: i32) -> (i32, i32) {
    %c0_i32 = arith.constant 0 : i32
    %c0_i32_0 = arith.constant 0 : i32
    %c0_i32_1 = arith.constant 0 : i32
    return %c0_i32, %c0_i32_0 : i32, i32
  }
  func.func @transform_5(%arg0: i32) -> (i32, i32) {
    %c0_i32 = arith.constant 0 : i32
    %c0_i32_0 = arith.constant 0 : i32
    return %arg0, %c0_i32 : i32, i32
  }
}

module attributes {stable_mosaic.version = 11 : i64} {
  func.func @_mlp_cnn_kernel(%arg0: i32, %arg1: memref<128x288xbf16, #tpu.memory_space<vmem>>, %arg2: memref<288x128xbf16, #tpu.memory_space<vmem>>, %arg3: memref<1x128xf32, #tpu.memory_space<vmem>>, %arg4: memref<128x32xbf16, #tpu.memory_space<vmem>>, %arg5: memref<1x32xf32, #tpu.memory_space<vmem>>, %arg6: memref<128x32xf32, #tpu.memory_space<vmem>>) attributes {dimension_semantics = [#tpu.dimension_semantics<parallel>], iteration_bounds = array<i64: 4>, scalar_prefetch = 0 : i64, scratch_operands = 0 : i64, tpu.core_type = #tpu.core_type<tc>, window_params = [{transform_indices = @transform_0, window_bounds = array<i64: 128, 288>}, {pipeline_mode = #tpu.pipeline_mode<synchronous>, transform_indices = @transform_1, window_bounds = array<i64: 288, 128>}, {pipeline_mode = #tpu.pipeline_mode<synchronous>, transform_indices = @transform_2, window_bounds = array<i64: 1, 128>}, {pipeline_mode = #tpu.pipeline_mode<synchronous>, transform_indices = @transform_3, window_bounds = array<i64: 128, 32>}, {pipeline_mode = #tpu.pipeline_mode<synchronous>, transform_indices = @transform_4, window_bounds = array<i64: 1, 32>}, {transform_indices = @transform_5, window_bounds = array<i64: 128, 32>}]} {
    %c0 = arith.constant 0 : index
    %c0_0 = arith.constant 0 : index
    %0 = vector.load %arg1[%c0, %c0_0] : memref<128x288xbf16, #tpu.memory_space<vmem>>, vector<128x288xbf16>
    %c0_1 = arith.constant 0 : index
    %c0_2 = arith.constant 0 : index
    %1 = vector.load %arg2[%c0_1, %c0_2] : memref<288x128xbf16, #tpu.memory_space<vmem>>, vector<288x128xbf16>
    %cst = arith.constant dense<0.000000e+00> : vector<128x128xf32>
    %2 = tpu.matmul %0, %1, %cst {dimension_numbers = #tpu.dot_dimension_numbers<[1], [0], [0], [1], [0, 0, 1, 1], [], []>} : vector<128x288xbf16>, vector<288x128xbf16>, vector<128x128xf32> -> vector<128x128xf32>
    %c0_3 = arith.constant 0 : index
    %c0_4 = arith.constant 0 : index
    %3 = vector.load %arg3[%c0_3, %c0_4] : memref<1x128xf32, #tpu.memory_space<vmem>>, vector<1x128xf32>
    %4 = vector.broadcast %3 : vector<1x128xf32> to vector<128x128xf32>
    %5 = arith.addf %2, %4 : vector<128x128xf32>
    %6 = arith.truncf %5 : vector<128x128xf32> to vector<128x128xbf16>
    %cst_5 = arith.constant 5.000000e-01 : bf16
    %7 = vector.broadcast %cst_5 : bf16 to vector<128x128xbf16>
    %8 = arith.mulf %7, %6 : vector<128x128xbf16>
    %9 = arith.mulf %6, %6 : vector<128x128xbf16>
    %10 = arith.mulf %9, %6 : vector<128x128xbf16>
    %cst_6 = arith.constant 4.467770e-02 : bf16
    %11 = vector.broadcast %cst_6 : bf16 to vector<128x128xbf16>
    %12 = arith.mulf %11, %10 : vector<128x128xbf16>
    %13 = arith.addf %6, %12 : vector<128x128xbf16>
    %cst_7 = arith.constant 7.968750e-01 : bf16
    %14 = vector.broadcast %cst_7 : bf16 to vector<128x128xbf16>
    %15 = arith.mulf %14, %13 : vector<128x128xbf16>
    %16 = math.tanh %15 : vector<128x128xbf16>
    %cst_8 = arith.constant 1.000000e+00 : bf16
    %17 = vector.broadcast %cst_8 : bf16 to vector<128x128xbf16>
    %18 = arith.addf %17, %16 : vector<128x128xbf16>
    %19 = arith.mulf %8, %18 : vector<128x128xbf16>
    %c0_9 = arith.constant 0 : index
    %c0_10 = arith.constant 0 : index
    %20 = vector.load %arg4[%c0_9, %c0_10] : memref<128x32xbf16, #tpu.memory_space<vmem>>, vector<128x32xbf16>
    %cst_11 = arith.constant dense<0.000000e+00> : vector<128x32xf32>
    %21 = tpu.matmul %19, %20, %cst_11 {dimension_numbers = #tpu.dot_dimension_numbers<[1], [0], [0], [1], [0, 0, 1, 1], [], []>} : vector<128x128xbf16>, vector<128x32xbf16>, vector<128x32xf32> -> vector<128x32xf32>
    %c0_12 = arith.constant 0 : index
    %c0_13 = arith.constant 0 : index
    %22 = vector.load %arg5[%c0_12, %c0_13] : memref<1x32xf32, #tpu.memory_space<vmem>>, vector<1x32xf32>
    %23 = vector.broadcast %22 : vector<1x32xf32> to vector<128x32xf32>
    %24 = arith.addf %21, %23 : vector<128x32xf32>
    %c0_14 = arith.constant 0 : index
    %c0_15 = arith.constant 0 : index
    %25 = vector.load %arg6[%c0_14, %c0_15] : memref<128x32xf32, #tpu.memory_space<vmem>>, vector<128x32xf32>
    tpu.vector_store %arg6[%c0_14, %c0_15], %24 {strides = array<i32>} : memref<128x32xf32, #tpu.memory_space<vmem>>, vector<128x32xf32>,
    return
  }
  func.func @transform_0(%arg0: i32) -> (i32, i32) {
    %c0_i32 = arith.constant 0 : i32
    %c0_i32_0 = arith.constant 0 : i32
    return %arg0, %c0_i32 : i32, i32
  }
  func.func @transform_1(%arg0: i32) -> (i32, i32) {
    %c0_i32 = arith.constant 0 : i32
    %c0_i32_0 = arith.constant 0 : i32
    %c0_i32_1 = arith.constant 0 : i32
    return %c0_i32, %c0_i32_0 : i32, i32
  }
  func.func @transform_2(%arg0: i32) -> (i32, i32) {
    %c0_i32 = arith.constant 0 : i32
    %c0_i32_0 = arith.constant 0 : i32
    %c0_i32_1 = arith.constant 0 : i32
    return %c0_i32, %c0_i32_0 : i32, i32
  }
  func.func @transform_3(%arg0: i32) -> (i32, i32) {
    %c0_i32 = arith.constant 0 : i32
    %c0_i32_0 = arith.constant 0 : i32
    %c0_i32_1 = arith.constant 0 : i32
    return %c0_i32, %c0_i32_0 : i32, i32
  }
  func.func @transform_4(%arg0: i32) -> (i32, i32) {
    %c0_i32 = arith.constant 0 : i32
    %c0_i32_0 = arith.constant 0 : i32
    %c0_i32_1 = arith.constant 0 : i32
    return %c0_i32, %c0_i32_0 : i32, i32
  }
  func.func @transform_5(%arg0: i32) -> (i32, i32) {
    %c0_i32 = arith.constant 0 : i32
    %c0_i32_0 = arith.constant 0 : i32
    return %arg0, %c0_i32 : i32, i32
  }
}

</mosaic_0001>

<bundles_post_ra>
// kernel: mlp_cnn_pallas.1
= control target key start
LH: loop header
LB: loop body
LE: loop exit
PB: predicated region body
PF: predicated region fallthrough
CT: control target
= control target key end

     0   :  { %10 = vsyncpa [#allocation3], 0  ;;  %s1866_s0 = inlined_call_operand.vmem [shape: bf16[512,288], index: 0, kind: input, shape index: {}]   ;;  %s1867_s1 = inlined_call_operand.vmem [shape: bf16[288,128], index: 1, kind: input, shape index: {}]   ;;  %s1868_s2 = inlined_call_operand.vmem [shape: f32[1,128], index: 2, kind: input, shape index: {}]   ;;  %s1869_s3 = inlined_call_operand.vmem [shape: bf16[128,32], index: 3, kind: input, shape index: {}]   ;;  %s1870_s4 = inlined_call_operand.vmem [shape: f32[1,32], index: 4, kind: input, shape index: {}]   ;;  %s1871_s5 = inlined_call_operand.hbm [shape: f32[512,32], index: 5, kind: output, shape index: {}]  }
   0x1   :  { %12 = vsyncpa [#allocation3 + $0x1], 0  ;;  %s1524_s18 = smov 0   ;;  %s1526_s19 = smov 0  }
   0x2   :  { %s1528_s20 = smov 0   ;;  %s1530_s21 = smov 0  }
   0x3 LB: > { %s1545_s22 = sadd.s32 4294967295, %s1489_s21   ;;  %s1096_s23 = sadd.s32 4294967294, %s1489_s21   ;;  %s1489_s21 = sphi %s1530_s21, %s1877_s21   ;;  %s1485_s20 = sphi %s1528_s20, %s1876_s20   ;;  %s1481_s19 = sphi %s1526_s19, %s1875_s19   ;;  %s1477_s18 = sphi %s1524_s18, %s1874_s18  }
   0x4   : > { %s1549_s24 = sadd.s32 1, %s1489_s21   ;;  %s135_s25 = sadd.s32 1, %s1485_s20 }
   0x5   : > { %s132_s26 = ssub.s32 %s1489_s21, %s1549_s24  ;;  %p145_p0 = scmp.ne.s32.totalorder %s1485_s20, %s1481_s19 }
   0x6   : > { %p133_p1 = scmp.eq.s32.totalorder %s132_s26, 0  ;;  %p146_p2 = scmp.eq.s32.totalorder %s1545_s22, 3 }
   0x7   : > { %p151_p3 = scmp.ne.s32.totalorder %s1481_s19, %s1477_s18  ;;  %p152_p4 = scmp.eq.s32.totalorder %s1096_s23, 3 }
   0x8   : > { %s1560_s27 = scalar_select %p133_p1, %s1485_s20, %s135_s25  }
   0x9   : > { %p1562_p5 = por %p146_p2, %p145_p0  ;;  %p1566_p6 = por %p152_p4, %p151_p3 }
   0xa   : > { %p1099_p7 = scmp.ge.s32.totalorder %s1489_s21, 1  ;;  %p192_p8 = scmp.lt.s32.totalorder %s1489_s21, 5 }
   0xc   : > { %p193_p9 = pnand %p1099_p7, %p192_p8 }
   0xd   : > { %v1353_v0 = vld [vmem:[%s1867_s1 + $0x40] sm:$0xff] (!%p193_p9)   ;;  %s1101_s7 = sshll.u32 (!%p193_p9), %s1545_s22, 4  ;;  %v1355_v2 = vld [vmem:[%s1867_s1 + $0x48] sm:$0xff] (!%p193_p9)   ;;  %v1357_v4 = vld [vmem:[%s1867_s1 + $0x50] sm:$0xff] (!%p193_p9)   ;;  %vm537_vm0 = vcmask (!%p193_p9), 261120   ;;  %s218_s17 = sand.u32 (!%p193_p9), 1, %s1481_s19  }
   0xe   : > { %196 = sbr.rel (%p193_p9) target bundleno = 583 (0x247), region = 40  ;;  %v1354_v1 = vld [vmem:[%s1867_s1] sm:$0xff] (!%p193_p9)   ;;  %1169 = vmatprep.subr.bf16.mxu0 (!%p193_p9), %v1353_v0  ;;  %v1356_v3 = vld [vmem:[%s1867_s1 + $0x8] sm:$0xff] (!%p193_p9)   ;;  %p222_p10 = scmp.lt.s32.totalorder (!%p193_p9), %s1101_s7, 63  ;;  %v1358_v5 = vld [vmem:[%s1867_s1 + $0x10] sm:$0xff] (!%p193_p9)  }
   0xf   : > { %1170 = vmatpush3.bf16.msra.mxu0 (!%p193_p9), %v1354_v1  ;;  %v1359_v6 = vld [vmem:[%s1867_s1 + $0x58] sm:$0xff] (!%p193_p9)   ;;  %v1361_v8 = vld [vmem:[%s1867_s1 + $0x60] sm:$0xff] (!%p193_p9)   ;;  %v1363_v11 = vld [vmem:[%s1867_s1 + $0x68] sm:$0xff] (!%p193_p9)   ;;  %s1100_s23 = sshll.u32 (!%p193_p9), %s218_s17, 7  ;;  %s1168_s30 = sshll.u32 (!%p193_p9), %s1545_s22, 11 }
  0x10   : > { %1171 = vmatprep.subr.bf16.mxu0 (!%p193_p9), %v1355_v2  ;;  %v1360_v7 = vld [vmem:[%s1867_s1 + $0x18] sm:$0xff] (!%p193_p9)   ;;  %v1362_v9 = vld [vmem:[%s1867_s1 + $0x20] sm:$0xff] (!%p193_p9)   ;;  %v1364_v12 = vld [vmem:[%s1867_s1 + $0x28] sm:$0xff] (!%p193_p9)   ;;  %s1813_s10 = scalar_lea.hbm (!%p193_p9), %s1871_s5, %s1168_s30  ;;  %s1825_s22 = scalar_lea.sflag (!%p193_p9), [#allocation3], %s218_s17 }
  0x11   : > { %v1368_v10 = vld [vmem:[%s1867_s1 + $0x80] sm:$0xff] (!%p193_p9)   ;;  %v1365_v13 = vld [vmem:[%s1867_s1 + $0x70] sm:$0xff] (!%p193_p9)   ;;  %v1373_v15 = vld [vmem:[%s1867_s1 + $0x88] sm:$0xff] (!%p193_p9)   ;;  %s1491_s12 = smov (!%p193_p9), [#allocation2]  }
  0x12   : > { %1259 = vmatprep.subr.bf16.mxu1 (!%p193_p9), %v1368_v10  ;;  %v1366_v18 = vld [vmem:[%s1867_s1 + $0x30] sm:$0xff] (!%p193_p9)   ;;  %v1367_v19 = vld [vmem:[%s1867_s1 + $0x78] sm:$0xff] (!%p193_p9)   ;;  %v1403_v42 = vld [vmem:[%s1869_s3] sm:$0xff] (!%p193_p9)   ;;  %s1431_s13 = sshll.u32 (!%p193_p9), %s1491_s12, 4  ;;  %s1432_s13 = int_to_ptr.vmem [resolvable:$false] %s1431_s13 }
  0x13   : > { %1172 = vmatpush3.bf16.msra.mxu0 (!%p193_p9), %v1356_v3  ;;  %1260 = vmatpush3.bf16.msra.mxu1 (!%p193_p9), %v1368_v10  ;;  %v1369_v21 = vld [vmem:[%s1867_s1 + $0x38] sm:$0xff] (!%p193_p9)   ;;  %v1404_v43 = vld [vmem:[%s1869_s3 + $0x8] sm:$0xff] (!%p193_p9)   ;;  %v1405_v44 = vld [vmem:[%s1869_s3 + $0x10] sm:$0xff] (!%p193_p9)   ;;  %s1433_s14 = scalar_lea.vmem (!%p193_p9), %s1432_s13, 4096 }
  0x14   : > { %1173 = vmatprep.subr.bf16.mxu0 (!%p193_p9), %v1357_v4  ;;  %1261 = vmatprep.subr.bf16.mxu1 (!%p193_p9), %v1373_v15  ;;  %v1406_v45 = vld [vmem:[%s1869_s3 + $0x18] sm:$0xff] (!%p193_p9)   ;;  %v1407_v46 = vld [vmem:[%s1869_s3 + $0x20] sm:$0xff] (!%p193_p9)   ;;  %v1408_v47 = vld [vmem:[%s1869_s3 + $0x28] sm:$0xff] (!%p193_p9)  }
  0x15   : > { %s1879_s7 = smov (!%p222_p10, %s1101_s7), 63  ;;  %v1409_v48 = vld [vmem:[%s1869_s3 + $0x30] sm:$0xff]   ;;  %v1410_v49 = vld [vmem:[%s1869_s3 + $0x38] sm:$0xff]   ;;  %v1693_v58 = vld [vmem:[%s1868_s2] ss:$0 sm:$0xff] }
  0x16   : > { %s1311_s6 = smul.u32 12, %s1879_s7 }
  0x17   : > { %1174 = vmatpush3.bf16.msra.mxu0 %v1358_v5  ;;  %1262 = vmatpush3.bf16.msra.mxu1 %v1373_v15 }
  0x18   : > { %1175 = vmatprep.subr.bf16.mxu0 %v1359_v6  ;;  %s1609_s16 = scalar_lea.vmem %s1866_s0, %s1311_s6  ;;  %1279 = vmatprep.subr.bf16.mxu1 %v1403_v42 }
  0x19   : > { %v1372_v14 = vld [vmem:[%s1609_s16 + $0x4] ss:$12 sps:$4 sm:$0xff]   ;;  %v1374_v16 = vld [vmem:[%s1609_s16 + $0x8] ss:$12 sps:$4 sm:$0xff]   ;;  %v1375_v17 = vld [vmem:[%s1609_s16 + $0x20] ss:$12 sps:$4 sm:$0xff]  }
  0x1a   : > { %594 = vmatprep.mubr.bf16.mxu0 %v1372_v14  ;;  %1263 = vmatprep.mubr.msk.bf16.mxu1 %vm537_vm0, %v1374_v16  ;;  %v1382_v20 = vld [vmem:[%s1609_s16 + $0x38] ss:$12 sps:$4 sm:$0xff]   ;;  %v1370_v22 = vld [vmem:[%s1609_s16] ss:$12 sps:$4 sm:$0xff]   ;;  %v1383_v23 = vld [vmem:[%s1609_s16 + $0x50] ss:$12 sps:$4 sm:$0xff]  }
  0x1b   : > { %1176 = vmatpush3.bf16.msra.mxu0 %v1360_v7  ;;  %1264 = vmatmul.mubr.msk.bf16.vlgmr.msra.gmra.mrb[0].mxu1 %vm537_vm0, %v1375_v17  ;;  %v1390_v24 = vld [vmem:[%s1609_s16 + $0x68] ss:$12 sps:$4 sm:$0xff]   ;;  %v1378_v26 = vld [vmem:[%s1609_s16 + $0x18] ss:$12 sps:$4 sm:$0xff]   ;;  %v1391_v27 = vld [vmem:[%s1609_s16 + $0x80] ss:$12 sps:$4 sm:$0xff]  }
  0x1c   : > { %1177 = vmatprep.subr.bf16.mxu0 %v1361_v8  ;;  %1267 = vmatprep.mubr.msk.bf16.mxu1 %vm537_vm0, %v1382_v20  ;;  %v1376_v25 = vld [vmem:[%s1609_s16 + $0x1c] ss:$12 sps:$4 sm:$0xff]   ;;  %v1398_v28 = vld [vmem:[%s1609_s16 + $0x98] ss:$12 sps:$4 sm:$0xff]   ;;  %v1379_v29 = vld [vmem:[%s1609_s16 + $0x34] ss:$12 sps:$4 sm:$0xff]  }
  0x1d   : > { %v1399_v30 = vld [vmem:[%s1609_s16 + $0xb0] ss:$12 sps:$4 sm:$0xff]   ;;  %v1384_v32 = vld [vmem:[%s1609_s16 + $0x4c] ss:$12 sps:$4 sm:$0xff]   ;;  %v1386_v33 = vld [vmem:[%s1609_s16 + $0x48] ss:$12 sps:$4 sm:$0xff]   ;;  %1280 = vmatpush3.bf16.msra.mxu1 %v1403_v42 }
  0x1e   : > { %v1381_v31 = vld [vmem:[%s1609_s16 + $0x30] ss:$12 sps:$4 sm:$0xff]   ;;  %v1389_v35 = vld [vmem:[%s1609_s16 + $0x60] ss:$12 sps:$4 sm:$0xff]   ;;  %v1394_v37 = vld [vmem:[%s1609_s16 + $0x78] ss:$12 sps:$4 sm:$0xff]   ;;  %1281 = vmatprep.subr.bf16.mxu1 %v1404_v43 }
  0x1f   : > { %1178 = vmatpush3.bf16.msra.mxu0 %v1362_v9  ;;  %v1387_v34 = vld [vmem:[%s1609_s16 + $0x64] ss:$12 sps:$4 sm:$0xff]   ;;  %v1392_v36 = vld [vmem:[%s1609_s16 + $0x7c] ss:$12 sps:$4 sm:$0xff]   ;;  %v1395_v38 = vld [vmem:[%s1609_s16 + $0x94] ss:$12 sps:$4 sm:$0xff]  }
  0x20   : > { %1179 = vmatprep.subr.bf16.mxu0 %v1363_v11  ;;  %v1397_v39 = vld [vmem:[%s1609_s16 + $0x90] ss:$12 sps:$4 sm:$0xff]   ;;  %v1400_v40 = vld [vmem:[%s1609_s16 + $0xac] ss:$12 sps:$4 sm:$0xff]   ;;  %v1402_v41 = vld [vmem:[%s1609_s16 + $0xa8] ss:$12 sps:$4 sm:$0xff]  }
  0x21   : > { %1282 = vmatpush3.bf16.msra.mxu1 %v1404_v43  ;;  %s1780_s16 = scalar_lea.vmem [#allocation2], %s1100_s23 }
  0x22   : > { %1283 = vmatprep.subr.bf16.mxu1 %v1405_v44  ;;  %s1034_s6 = sshll.u32 %s1780_s16, 4  ;;  %s1815_s6 = int_to_ptr.vmem [resolvable:$true] %s1034_s6 }
  0x23   : > { %1180 = vmatpush3.bf16.msra.mxu0 %v1364_v12  ;;  %1268 = vmatmul.mubr.msk.bf16.gmra.mrb[4].mxu1 %vm537_vm0, %v1383_v23  ;;  %s1427_s11 = scalar_lea.vmem %s1815_s6, 2048  ;;  %p1434_p0 = scmp.lt.s32.totalorder %s1815_s6, %s1432_s13 }
  0x24   : > { %1181 = vmatprep.subr.bf16.mxu0 %v1365_v13  ;;  %1271 = vmatprep.mubr.msk.bf16.mxu1 %vm537_vm0, %v1390_v24  ;;  %p1428_p11 = scmp.ne.s32.totalorder %s1815_s6, %s1427_s11  ;;  %p1435_p1 = scmp.lt.s32.totalorder %s1433_s14, %s1427_s11 }
  0x25   : > { %1284 = vmatpush3.bf16.msra.mxu1 %v1405_v44 }
  0x26   : > { %1285 = vmatprep.subr.bf16.mxu1 %v1406_v45  ;;  %p1429_p12 = pnand %p1428_p11, %p1562_p5  ;;  %p1436_p2 = por %p1435_p1, %p1434_p0 }
  0x27   : > { %1182 = vmatpush3.bf16.msra.mxu0 %v1366_v18 }
  0x28   : > { %1183 = vmatprep.subr.bf16.mxu0 %v1367_v19  ;;  %p1430_p13 = pneg %p1429_p12 }
  0x29   : > { %1286 = vmatpush3.bf16.msra.mxu1 %v1406_v45 }
  0x2a   : > { %1287 = vmatprep.subr.bf16.mxu1 %v1407_v46  ;;  %p1437_p3 = pnand %p1436_p2, %p1430_p13 }
  0x2b   : > { %1184 = vmatpush3.bf16.msra.mxu0 %v1369_v21  ;;  %1272 = vmatmul.mubr.msk.bf16.gmra.mrb[8].mxu1 %vm537_vm0, %v1391_v27 }
  0x2c   : > { %1275 = vmatprep.mubr.msk.bf16.mxu1 %vm537_vm0, %v1398_v28 }
  0x2d   : > { %1288 = vmatpush3.bf16.msra.mxu1 %v1407_v46 }
  0x2e   : > { %595 = vmatmul.mubr.bf16.vlgmr.msra.gmra.mrb[0].mxu0 %v1370_v22  ;;  %1289 = vmatprep.subr.bf16.mxu1 %v1408_v47 }
  0x2f   : > { %602 = vmatprep.mubr.bf16.mxu0 %v1376_v25 }
  0x31   : > { %1290 = vmatpush3.bf16.msra.mxu1 %v1408_v47 }
  0x32   : > { %1291 = vmatprep.subr.bf16.mxu1 %v1409_v48 }
  0x33   : > { %1276 = vmatmul.mubr.msk.bf16.gmra.mrb[12].mxu1 %vm537_vm0, %v1399_v30 }
  0x35   : > { %1292 = vmatpush3.bf16.msra.mxu1 %v1409_v48 }
  0x36   : > { %603 = vmatmul.mubr.bf16.gmra.mrb[4].mxu0 %v1378_v26  ;;  %1293 = vmatprep.subr.bf16.mxu1 %v1410_v49 }
  0x37   : > { %610 = vmatprep.mubr.bf16.mxu0 %v1379_v29 }
  0x39   : > { %1294 = vmatpush3.bf16.msra.mxu1 %v1410_v49 }
  0x3e   : > { %611 = vmatmul.mubr.bf16.gmra.mrb[8].mxu0 %v1381_v31 }
  0x3f   : > { %618 = vmatprep.mubr.bf16.mxu0 %v1384_v32 }
  0x46   : > { %619 = vmatmul.mubr.bf16.gmra.mrb[12].mxu0 %v1386_v33 }
  0x47   : > { %626 = vmatprep.mubr.bf16.mxu0 %v1387_v34 }
  0x4e   : > { %627 = vmatmul.mubr.bf16.gmra.mrb[16].mxu0 %v1389_v35 }
  0x4f   : > { %634 = vmatprep.mubr.bf16.mxu0 %v1392_v36 }
  0x56   : > { %635 = vmatmul.mubr.bf16.gmra.mrb[20].mxu0 %v1394_v37 }
  0x57   : > { %642 = vmatprep.mubr.bf16.mxu0 %v1395_v38 }
  0x5e   : > { %643 = vmatmul.mubr.bf16.gmra.mrb[24].mxu0 %v1397_v39 }
  0x5f   : > { %650 = vmatprep.mubr.bf16.mxu0 %v1400_v40 }
  0x66   : > { %651 = vmatmul.mubr.bf16.gmra.mrb[28].mxu0 %v1402_v41 }
  0xee   : > { %v1265_v50 = vpop.f32.mrb[0].mxu1 }
  0xef   : > { %v693_v51 = vpop.f32.mrb[1].mxu1 }
  0xf0   : > { %v1266_v52 = vpop.f32.mrb[2].mxu1 }
  0xf1   : > { %v696_v53 = vpop.f32.mrb[3].mxu1 }
  0xf6   : > { %v1688_v54 = vpop.f32.mrb[4].mxu1 }
  0xf7   : > { %v709_v56 = vpop.f32.mrb[5].mxu1 }
  0xf8   : > { %v1695_v59 = vpop.f32.mrb[6].mxu1 }
  0xf9   : > { %v712_v62 = vpop.f32.mrb[7].mxu1 }
  0xfe   : > { %v1699_v4 = vpop.f32.mrb[8].mxu1 }
  0xff   : > { %v1701_v7 = vpop.f32.mrb[9].mxu1 }
 0x100   : > { %v1703_v9 = vpop.f32.mrb[10].mxu1 }
 0x101   : > { %v1185_v55 = vpop.f32.mrb[0].mxu0  ;;  %v1707_v13 = vpop.f32.mrb[11].mxu1 }
 0x102   : > { %v1186_v57 = vpop.f32.mrb[1].mxu0 }
 0x103   : > { %v1187_v60 = vadd.f32 %v1186_v57, %v1185_v55  ;;  %v1188_v61 = vpop.f32.mrb[2].mxu0 }
 0x104   : > { %v1189_v63 = vpop.f32.mrb[3].mxu0 }
 0x105   : > { %v1190_v0 = vadd.f32 %v1189_v63, %v1188_v61  ;;  %v597_v1 = vadd.f32 %v1187_v60, %v1693_v58 }
 0x106   : > { %v1714_v21 = vpop.f32.mrb[12].mxu1 }
 0x107   : > { %v694_v2 = vadd.f32 %v693_v51, %v597_v1  ;;  %v600_v3 = vadd.f32 %v1190_v0, %v1693_v58  ;;  %v1716_v25 = vpop.f32.mrb[13].mxu1 }
 0x108   : > { %v1718_v27 = vpop.f32.mrb[14].mxu1 }
 0x109   : > { %v697_v5 = vadd.f32 %v696_v53, %v600_v3  ;;  %v1191_v6 = vpop.f32.mrb[4].mxu0  ;;  %v1723_v32 = vpop.f32.mrb[15].mxu1 }
 0x10a   : > { %v1192_v8 = vpop.f32.mrb[5].mxu0 }
 0x10b   : > { %v1705_v10 = vpack.c.bf16 %v697_v5, %v694_v2  ;;  %v1193_v11 = vadd.f32 %v1192_v8, %v1191_v6  ;;  %v1194_v12 = vpop.f32.mrb[6].mxu0 }
 0x10c   : > { %v1195_v14 = vpop.f32.mrb[7].mxu0 }
 0x10d   : > { %v772_v15 = vmul.bf16 %v1705_v10, %v1705_v10  ;;  %v605_v16 = vadd.f32 %v1193_v11, %v1693_v58  ;;  %v1196_v17 = vadd.f32 %v1195_v14, %v1194_v12  ;;  %v764_v1 = vmul.bf16 1056980736, %v1705_v10 }
 0x10f   : > { %v780_v18 = vmul.bf16 %v772_v15, %v1705_v10  ;;  %v702_v19 = vadd.f32 %v1265_v50, %v605_v16  ;;  %v608_v20 = vadd.f32 %v1196_v17, %v1693_v58 }
 0x111   : > { %v788_v22 = vmul.bf16 1027030327, %v780_v18  ;;  %v705_v23 = vadd.f32 %v1266_v52, %v608_v20  ;;  %v1197_v24 = vpop.f32.mrb[8].mxu0 }
 0x112   : > { %v1198_v26 = vpop.f32.mrb[9].mxu0 }
 0x113   : > { %v1720_v28 = vpack.c.bf16 %v705_v23, %v702_v19  ;;  %v1199_v29 = vadd.f32 %v1198_v26, %v1197_v24  ;;  %v1200_v30 = vpop.f32.mrb[10].mxu0  ;;  %v796_v31 = vadd.bf16 %v788_v22, %v1705_v10 }
 0x114   : > { %v1201_v33 = vpop.f32.mrb[11].mxu0 }
 0x115   : > { %v773_v34 = vmul.bf16 %v1720_v28, %v1720_v28  ;;  %v1202_v35 = vadd.f32 %v1201_v33, %v1200_v30  ;;  %v613_v36 = vadd.f32 %v1199_v29, %v1693_v58  ;;  %v804_v37 = vmul.bf16 1061961548, %v796_v31 }
 0x116   : > { %v765_v30 = vmul.bf16 1056980736, %v1720_v28 }
 0x117   : > { %v781_v38 = vmul.bf16 %v773_v34, %v1720_v28  ;;  %v710_v39 = vadd.f32 %v709_v56, %v613_v36  ;;  %v616_v40 = vadd.f32 %v1202_v35, %v1693_v58  ;;  %1411 = vtanh.bf16 %v804_v37 }
 0x119   : > { %v789_v41 = vmul.bf16 1027030327, %v781_v38  ;;  %v713_v42 = vadd.f32 %v712_v62, %v616_v40  ;;  %v1203_v43 = vpop.f32.mrb[12].mxu0 }
 0x11a   : > { %v1204_v44 = vpop.f32.mrb[13].mxu0 }
 0x11b   : > { %v797_v45 = vadd.bf16 %v789_v41, %v1720_v28  ;;  %v1731_v46 = vpack.c.bf16 %v713_v42, %v710_v39  ;;  %v1205_v47 = vadd.f32 %v1204_v44, %v1203_v43  ;;  %v1206_v48 = vpop.f32.mrb[14].mxu0 }
 0x11c   : > { %v1207_v49 = vpop.f32.mrb[15].mxu0 }
 0x11d   : > { %v805_v50 = vmul.bf16 1061961548, %v797_v45  ;;  %v774_v51 = vmul.bf16 %v1731_v46, %v1731_v46  ;;  %v621_v52 = vadd.f32 %v1205_v47, %v1693_v58  ;;  %v1208_v53 = vadd.f32 %v1207_v49, %v1206_v48 }
 0x11e   : > { %v766_v45 = vmul.bf16 1056980736, %v1731_v46 }
 0x11f   : > { %1413 = vtanh.bf16 %v805_v50  ;;  %v782_v55 = vmul.bf16 %v774_v51, %v1731_v46  ;;  %v718_v56 = vadd.f32 %v1688_v54, %v621_v52  ;;  %v624_v57 = vadd.f32 %v1208_v53, %v1693_v58 }
 0x121   : > { %v790_v60 = vmul.bf16 1027030327, %v782_v55  ;;  %v721_v61 = vadd.f32 %v1695_v59, %v624_v57  ;;  %v1209_v62 = vpop.f32.mrb[16].mxu0 }
 0x122   : > { %v1412_v63 = vpop.eup %1411  ;;  %v1210_v0 = vpop.f32.mrb[17].mxu0 }
 0x123   : > { %v1741_v2 = vpack.c.bf16 %v721_v61, %v718_v56  ;;  %v1211_v3 = vadd.f32 %v1210_v0, %v1209_v62  ;;  %v1212_v5 = vpop.f32.mrb[18].mxu0  ;;  %v820_v6 = vadd.bf16 1065369472, %v1412_v63  ;;  %v798_v8 = vadd.bf16 %v790_v60, %v1731_v46 }
 0x124   : > { %v1213_v11 = vpop.f32.mrb[19].mxu0 }
 0x125   : > { %v1214_v12 = vadd.f32 %v1213_v11, %v1212_v5  ;;  %v629_v54 = vadd.f32 %v1211_v3, %v1693_v58  ;;  %v828_v14 = vmul.bf16 %v820_v6, %v764_v1  ;;  %v806_v15 = vmul.bf16 1061961548, %v798_v8 }
 0x126   : > { %v775_v59 = vmul.bf16 %v1741_v2, %v1741_v2  ;;  %v767_v11 = vmul.bf16 1056980736, %v1741_v2 }
 0x127   : > { %v726_v16 = vadd.f32 %v1701_v7, %v629_v54  ;;  %1295 = vmatprep.mubr.bf16.mxu1 %v828_v14  ;;  %v632_v10 = vadd.f32 %v1214_v12, %v1693_v58  ;;  %1415 = vtanh.bf16 %v806_v15 }
 0x128   : > { %v783_v17 = vmul.bf16 %v775_v59, %v1741_v2 }
 0x129   : > { %v729_v18 = vadd.f32 %v1707_v13, %v632_v10  ;;  %v1215_v19 = vpop.f32.mrb[20].mxu0 }
 0x12a   : > { %v1414_v20 = vpop.eup %1413  ;;  %v1216_v22 = vpop.f32.mrb[21].mxu0  ;;  %v791_v23 = vmul.bf16 1027030327, %v783_v17 }
 0x12b   : > { %v1751_v24 = vpack.c.bf16 %v729_v18, %v726_v16  ;;  %v1217_v26 = vadd.f32 %v1216_v22, %v1215_v19  ;;  %v1218_v29 = vpop.f32.mrb[22].mxu0  ;;  %v821_v31 = vadd.bf16 1065369472, %v1414_v20 }
 0x12c   : > { %v1219_v7 = vpop.f32.mrb[23].mxu0  ;;  %v799_v33 = vadd.bf16 %v791_v23, %v1741_v2 }
 0x12d   : > { %v776_v34 = vmul.bf16 %v1751_v24, %v1751_v24  ;;  %v637_v35 = vadd.f32 %v1217_v26, %v1693_v58  ;;  %v1220_v13 = vadd.f32 %v1219_v7, %v1218_v29  ;;  %v829_v36 = vmul.bf16 %v821_v31, %v765_v30 }
 0x12e   : > { %v807_v37 = vmul.bf16 1061961548, %v799_v33  ;;  %v768_v22 = vmul.bf16 1056980736, %v1751_v24 }
 0x12f   : > { %v784_v38 = vmul.bf16 %v776_v34, %v1751_v24  ;;  %v734_v39 = vadd.f32 %v1699_v4, %v637_v35  ;;  %v640_v40 = vadd.f32 %v1220_v13, %v1693_v58  ;;  %1296 = vmatmul.mubr.bf16.vlgmr.msra.gmra.mrb[16].mxu1 %v829_v36 }
 0x130   : > { %1417 = vtanh.bf16 %v807_v37 }
 0x131   : > { %v792_v28 = vmul.bf16 1027030327, %v784_v38  ;;  %v737_v41 = vadd.f32 %v1703_v9, %v640_v40  ;;  %v1221_v42 = vpop.f32.mrb[24].mxu0 }
 0x132   : > { %v1416_v43 = vpop.eup %1415  ;;  %v1222_v44 = vpop.f32.mrb[25].mxu0 }
 0x133   : > { %v761_v47 = vpack.c.bf16 %v737_v41, %v734_v39  ;;  %v1223_v48 = vadd.f32 %v1222_v44, %v1221_v42  ;;  %v1224_v49 = vpop.f32.mrb[26].mxu0  ;;  %v822_v50 = vadd.bf16 1065369472, %v1416_v43  ;;  %v800_v51 = vadd.bf16 %v792_v28, %v1751_v24  ;;  %v1154_v42 = vld [vmem:[%s1870_s4] ss:$0 sm:$0xff] }
 0x134   : > { %v1225_v52 = vpop.f32.mrb[27].mxu0 }
 0x135   : > { %v1226_v4 = vadd.f32 %v1225_v52, %v1224_v49  ;;  %v645_v53 = vadd.f32 %v1223_v48, %v1693_v58  ;;  %v830_v55 = vmul.bf16 %v822_v50, %v766_v45  ;;  %v808_v56 = vmul.bf16 1061961548, %v800_v51 }
 0x136   : > { %v777_v57 = vmul.bf16 %v761_v47, %v761_v47  ;;  %v769_v34 = vmul.bf16 1056980736, %v761_v47 }
 0x137   : > { %v742_v9 = vadd.f32 %v1716_v25, %v645_v53  ;;  %1299 = vmatprep.mubr.bf16.mxu1 %v830_v55  ;;  %v648_v60 = vadd.f32 %v1226_v4, %v1693_v58  ;;  %1419 = vtanh.bf16 %v808_v56 }
 0x138   : > { %v785_v46 = vmul.bf16 %v777_v57, %v761_v47 }
 0x139   : > { %v745_v61 = vadd.f32 %v1723_v32, %v648_v60  ;;  %v1227_v62 = vpop.f32.mrb[28].mxu0 }
 0x13a   : > { %v1228_v63 = vpop.f32.mrb[29].mxu0  ;;  %v793_v0 = vmul.bf16 1027030327, %v785_v46 }
 0x13b   : > { %v1418_v1 = vpop.eup %1417  ;;  %v762_v3 = vpack.c.bf16 %v745_v61, %v742_v9  ;;  %v1229_v5 = vadd.f32 %v1228_v63, %v1227_v62  ;;  %v1230_v6 = vpop.f32.mrb[30].mxu0 }
 0x13c   : > { %v1231_v8 = vpop.f32.mrb[31].mxu0  ;;  %v823_v12 = vadd.bf16 1065369472, %v1418_v1  ;;  %v801_v54 = vadd.bf16 %v793_v0, %v761_v47 }
 0x13d   : > { %v778_v25 = vmul.bf16 %v762_v3, %v762_v3  ;;  %v653_v14 = vadd.f32 %v1229_v5, %v1693_v58  ;;  %v1232_v15 = vadd.f32 %v1231_v8, %v1230_v6  ;;  %v770_v36 = vmul.bf16 1056980736, %v762_v3 }
 0x13e   : > { %v831_v59 = vmul.bf16 %v823_v12, %v767_v11  ;;  %v809_v16 = vmul.bf16 1061961548, %v801_v54 }
 0x13f   : > { %v786_v10 = vmul.bf16 %v778_v25, %v762_v3  ;;  %v750_v32 = vadd.f32 %v1714_v21, %v653_v14  ;;  %v656_v17 = vadd.f32 %v1232_v15, %v1693_v58 }
 0x140   : > { %1300 = vmatmul.mubr.bf16.gmra.mrb[20].mxu1 %v831_v59  ;;  %1421 = vtanh.bf16 %v809_v16 }
 0x141   : > { %v794_v18 = vmul.bf16 1027030327, %v786_v10  ;;  %v753_v19 = vadd.f32 %v1718_v27, %v656_v17 }
 0x142   : > { %v1420_v20 = vpop.eup %1419 }
 0x143   : > { %v763_v2 = vpack.c.bf16 %v753_v19, %v750_v32  ;;  %v824_v23 = vadd.bf16 1065369472, %v1420_v20  ;;  %v802_v26 = vadd.bf16 %v794_v18, %v762_v3 }
 0x145   : > { %v832_v29 = vmul.bf16 %v824_v23, %v768_v22  ;;  %v810_v30 = vmul.bf16 1061961548, %v802_v26  ;;  %v779_v31 = vmul.bf16 %v763_v2, %v763_v2  ;;  %v771_v40 = vmul.bf16 1056980736, %v763_v2 }
 0x147   : > { %1303 = vmatprep.mubr.bf16.mxu1 %v832_v29  ;;  %1423 = vtanh.bf16 %v810_v30  ;;  %v787_v7 = vmul.bf16 %v779_v31, %v763_v2 }
 0x149   : > { %v795_v21 = vmul.bf16 1027030327, %v787_v7 }
 0x14b   : > { %v1422_v33 = vpop.eup %1421  ;;  %v803_v58 = vadd.bf16 %v795_v21, %v763_v2 }
 0x14c   : > { %v825_v35 = vadd.bf16 1065369472, %v1422_v33 }
 0x14d   : > { %v811_v27 = vmul.bf16 1061961548, %v803_v58 }
 0x14e   : > { %v833_v13 = vmul.bf16 %v825_v35, %v769_v34 }
 0x14f   : > { %1425 = vtanh.bf16 %v811_v27 }
 0x150   : > { %1304 = vmatmul.mubr.bf16.gmra.mrb[24].mxu1 %v833_v13 }
 0x152   : > { %v1424_v24 = vpop.eup %1423 }
 0x153   : > { %v826_v37 = vadd.bf16 1065369472, %v1424_v24 }
 0x155   : > { %v834_v38 = vmul.bf16 %v826_v37, %v770_v36 }
 0x157   : > { %1307 = vmatprep.mubr.bf16.mxu1 %v834_v38 }
 0x15a   : > { %v1426_v39 = vpop.eup %1425 }
 0x15b   : > { %v827_v28 = vadd.bf16 1065369472, %v1426_v39 }
 0x15d   : > { %v835_v41 = vmul.bf16 %v827_v28, %v771_v40 }
 0x15f   : > { %1308 = vmatmul.mubr.bf16.gmra.mrb[28].mxu1 %v835_v41 }
 0x202   : > { %v1297_v43 = vpop.f32.mrb[16].mxu1 }
 0x203   : > { %v950_v44 = vadd.f32 %v1297_v43, %v1154_v42  ;;  %v941_v45 = vpop.f32.mrb[17].mxu1 }
 0x204   : > { %v942_v47 = vadd.f32 %v1154_v42, %v941_v45  ;;  %v1298_v48 = vpop.f32.mrb[18].mxu1 }
 0x205   : > { %1006 = vst.msk [vmem:[%s1780_s16 + $0x10] sm:$0xff] %vm537_vm0, %v950_v44  ;;  %v953_v49 = vadd.f32 %v1298_v48, %v1154_v42  ;;  %v944_v50 = vpop.f32.mrb[19].mxu1 }
 0x206   : > { %1004 = vst.msk [vmem:[%s1780_s16] sm:$0xff] %vm537_vm0, %v942_v47  ;;  %v945_v51 = vadd.f32 %v1154_v42, %v944_v50 }
 0x207   : > { %1007 = vst.msk [vmem:[%s1780_s16 + $0x18] sm:$0xff] %vm537_vm0, %v953_v49 }
 0x208   : > { %1005 = vst.msk [vmem:[%s1780_s16 + $0x8] sm:$0xff] %vm537_vm0, %v945_v51 }
 0x213   : > { %v1301_v52 = vpop.f32.mrb[20].mxu1 }
 0x214   : > { %v966_v4 = vadd.f32 %v1301_v52, %v1154_v42  ;;  %v957_v53 = vpop.f32.mrb[21].mxu1 }
 0x215   : > { %v958_v55 = vadd.f32 %v1154_v42, %v957_v53  ;;  %v1302_v56 = vpop.f32.mrb[22].mxu1 }
 0x216   : > { %1010 = vst.msk [vmem:[%s1780_s16 + $0x30] sm:$0xff] %vm537_vm0, %v966_v4  ;;  %v969_v57 = vadd.f32 %v1302_v56, %v1154_v42  ;;  %v960_v9 = vpop.f32.mrb[23].mxu1 }
 0x217   : > { %1008 = vst.msk [vmem:[%s1780_s16 + $0x20] sm:$0xff] %vm537_vm0, %v958_v55  ;;  %v961_v60 = vadd.f32 %v1154_v42, %v960_v9 }
 0x218   : > { %1011 = vst.msk [vmem:[%s1780_s16 + $0x38] sm:$0xff] %vm537_vm0, %v969_v57 }
 0x219   : > { %1009 = vst.msk [vmem:[%s1780_s16 + $0x28] sm:$0xff] %vm537_vm0, %v961_v60 }
 0x223   : > { %v1305_v46 = vpop.f32.mrb[24].mxu1 }
 0x224   : > { %v982_v61 = vadd.f32 %v1305_v46, %v1154_v42  ;;  %v973_v62 = vpop.f32.mrb[25].mxu1 }
 0x225   : > { %v974_v63 = vadd.f32 %v1154_v42, %v973_v62  ;;  %v1306_v0 = vpop.f32.mrb[26].mxu1 }
 0x226   : > { %1014 = vst.msk [vmem:[%s1780_s16 + $0x50] sm:$0xff] %vm537_vm0, %v982_v61  ;;  %v985_v1 = vadd.f32 %v1306_v0, %v1154_v42  ;;  %v976_v3 = vpop.f32.mrb[27].mxu1 }
 0x227   : > { %1012 = vst.msk [vmem:[%s1780_s16 + $0x40] sm:$0xff] %vm537_vm0, %v974_v63  ;;  %v977_v5 = vadd.f32 %v1154_v42, %v976_v3 }
 0x228   : > { %1015 = vst.msk [vmem:[%s1780_s16 + $0x58] sm:$0xff] %vm537_vm0, %v985_v1 }
 0x229   : > { %1013 = vst.msk [vmem:[%s1780_s16 + $0x48] sm:$0xff] %vm537_vm0, %v977_v5 }
 0x232   : > { %v1309_v6 = vpop.f32.mrb[28].mxu1 }
 0x233   : > { %v998_v8 = vadd.f32 %v1309_v6, %v1154_v42  ;;  %v989_v11 = vpop.f32.mrb[29].mxu1 }
 0x234   : > { %v990_v12 = vadd.f32 %v1154_v42, %v989_v11  ;;  %v1310_v54 = vpop.f32.mrb[30].mxu1 }
 0x235   : > { %1018 = vst.msk [vmem:[%s1780_s16 + $0x70] sm:$0xff] %vm537_vm0, %v998_v8  ;;  %v1001_v25 = vadd.f32 %v1310_v54, %v1154_v42  ;;  %v992_v14 = vpop.f32.mrb[31].mxu1 }
 0x236   : > { %1016 = vst.msk [vmem:[%s1780_s16 + $0x60] sm:$0xff] %vm537_vm0, %v990_v12  ;;  %v993_v15 = vadd.f32 %v1154_v42, %v992_v14 }
 0x237   : > { %1019 = vst.msk [vmem:[%s1780_s16 + $0x78] sm:$0xff] %vm537_vm0, %v1001_v25 }
 0x238   : > { %1017 = vst.msk [vmem:[%s1780_s16 + $0x68] sm:$0xff] %vm537_vm0, %v993_v15 }
 0x239   : > { %1440 = shalt.err (!%p1437_p3)
}
 0x23a   : > { %s1441_s15 = scalar_lea.hbm %s1813_s10, 2048  ;;  %s1445_s23 = scalar_lea.hbm %s1871_s5, 8192 }
 0x23b   : > { %p1442_p4 = scmp.ne.s32.totalorder %s1813_s10, %s1441_s15  ;;  %p1446_p9 = scmp.lt.u32.totalorder %s1813_s10, %s1871_s5 }
 0x23c   : > { %p1447_p10 = scmp.lt.u32.totalorder %s1445_s23, %s1441_s15  ;;  %p1449_p12 = scmp.lt.u32.totalorder %s1441_s15, %s1813_s10 }
 0x23d   : > { %p1443_p7 = pnand %p1442_p4, %p1562_p5 }
 0x23e   : > { %p1448_p11 = por %p1447_p10, %p1446_p9 }
 0x23f   : > { %p1444_p8 = pneg %p1443_p7 }
 0x240   : > { %p1450_p13 = por %p1449_p12, %p1448_p11 }
 0x242   : > { %p1451_p0 = pnand %p1450_p13, %p1444_p8 }
 0x244   : > { %1454 = shalt.err (!%p1451_p0)
}
 0x245   : > { %s1492_s16 = smov 128   ;;  %s1493_s30 = smov 8  }
 0x246   : > { %1312 = dma.vmem_to_hbm [thread:$0]  (%p1562_p5), %s1815_s6, 2048, %s1813_s10, %s1825_s22, %s1492_s16, %s1492_s16, %s1493_s30  }
 0x247 PF: > { %p1318_p1 = scmp.ge.s32.totalorder %s1489_s21, 2  ;;  %s1049_s8 = sand.u32 1, %s1477_s18  }
 0x248   : > { %s1050_s9 = scalar_lea.sflag [#allocation3], %s1049_s8 }
 0x249   : > { %p1315_p2 = pnand %p1318_p1, %p1566_p6 }
 0x24b   : > { %1472 = dma.done.wait (!%p1315_p2), %s1050_s9, 2048  }
 0x24c   : > { %1474 = vsyncadd (!%p1315_p2), %s1050_s9, 4294965248  ;;  %p15_p3 = scmp.ge.s32.totalorder %s1549_s24, 6   ;;  %s1874_s18 = smov %s1481_s19 }
 0x24d   : > { %s1875_s19 = smov %s1485_s20  ;;  %s1876_s20 = smov %s1560_s27 }
 0x24e   : > { %s1877_s21 = smov %s1549_s24  ;;  %17 = sbr.rel (!%p15_p3) target bundleno = 3 (0x3), region = 75 }
 0x255   :  { %1055 = vsyncpa [#allocation3], 1 }
 0x256   :  { %1057 = vsyncpa [#allocation3 + $0x1], 1 }

// kernel: mlp_cnn_pallas.1
= control target key start
LH: loop header
LB: loop body
LE: loop exit
PB: predicated region body
PF: predicated region fallthrough
CT: control target
= control target key end

     0   :  { %10 = vsyncpa [#allocation3], 0  ;;  %s1866_s0 = inlined_call_operand.vmem [shape: bf16[512,288], index: 0, kind: input, shape index: {}]   ;;  %s1867_s1 = inlined_call_operand.vmem [shape: bf16[288,128], index: 1, kind: input, shape index: {}]   ;;  %s1868_s2 = inlined_call_operand.vmem [shape: f32[1,128], index: 2, kind: input, shape index: {}]   ;;  %s1869_s3 = inlined_call_operand.vmem [shape: bf16[128,32], index: 3, kind: input, shape index: {}]   ;;  %s1870_s4 = inlined_call_operand.vmem [shape: f32[1,32], index: 4, kind: input, shape index: {}]   ;;  %s1871_s5 = inlined_call_operand.hbm [shape: f32[512,32], index: 5, kind: output, shape index: {}]  }
   0x1   :  { %12 = vsyncpa [#allocation3 + $0x1], 0  ;;  %s1524_s18 = smov 0   ;;  %s1526_s19 = smov 0  }
   0x2   :  { %s1528_s20 = smov 0   ;;  %s1530_s21 = smov 0  }
   0x3 LB: > { %s1545_s22 = sadd.s32 4294967295, %s1489_s21   ;;  %s1096_s23 = sadd.s32 4294967294, %s1489_s21   ;;  %s1489_s21 = sphi %s1530_s21, %s1877_s21   ;;  %s1485_s20 = sphi %s1528_s20, %s1876_s20   ;;  %s1481_s19 = sphi %s1526_s19, %s1875_s19   ;;  %s1477_s18 = sphi %s1524_s18, %s1874_s18  }
   0x4   : > { %s1549_s24 = sadd.s32 1, %s1489_s21   ;;  %s135_s25 = sadd.s32 1, %s1485_s20 }
   0x5   : > { %s132_s26 = ssub.s32 %s1489_s21, %s1549_s24  ;;  %p145_p0 = scmp.ne.s32.totalorder %s1485_s20, %s1481_s19 }
   0x6   : > { %p133_p1 = scmp.eq.s32.totalorder %s132_s26, 0  ;;  %p146_p2 = scmp.eq.s32.totalorder %s1545_s22, 3 }
   0x7   : > { %p151_p3 = scmp.ne.s32.totalorder %s1481_s19, %s1477_s18  ;;  %p152_p4 = scmp.eq.s32.totalorder %s1096_s23, 3 }
   0x8   : > { %s1560_s27 = scalar_select %p133_p1, %s1485_s20, %s135_s25  }
   0x9   : > { %p1562_p5 = por %p146_p2, %p145_p0  ;;  %p1566_p6 = por %p152_p4, %p151_p3 }
   0xa   : > { %p1099_p7 = scmp.ge.s32.totalorder %s1489_s21, 1  ;;  %p192_p8 = scmp.lt.s32.totalorder %s1489_s21, 5 }
   0xc   : > { %p193_p9 = pnand %p1099_p7, %p192_p8 }
   0xd   : > { %v1353_v0 = vld [vmem:[%s1867_s1 + $0x40] sm:$0xff] (!%p193_p9)   ;;  %s1101_s7 = sshll.u32 (!%p193_p9), %s1545_s22, 4  ;;  %v1355_v2 = vld [vmem:[%s1867_s1 + $0x48] sm:$0xff] (!%p193_p9)   ;;  %v1357_v4 = vld [vmem:[%s1867_s1 + $0x50] sm:$0xff] (!%p193_p9)   ;;  %vm537_vm0 = vcmask (!%p193_p9), 261120   ;;  %s218_s17 = sand.u32 (!%p193_p9), 1, %s1481_s19  }
   0xe   : > { %196 = sbr.rel (%p193_p9) target bundleno = 583 (0x247), region = 40  ;;  %v1354_v1 = vld [vmem:[%s1867_s1] sm:$0xff] (!%p193_p9)   ;;  %1169 = vmatprep.subr.bf16.mxu0 (!%p193_p9), %v1353_v0  ;;  %v1356_v3 = vld [vmem:[%s1867_s1 + $0x8] sm:$0xff] (!%p193_p9)   ;;  %p222_p10 = scmp.lt.s32.totalorder (!%p193_p9), %s1101_s7, 63  ;;  %v1358_v5 = vld [vmem:[%s1867_s1 + $0x10] sm:$0xff] (!%p193_p9)  }
   0xf   : > { %1170 = vmatpush3.bf16.msra.mxu0 (!%p193_p9), %v1354_v1  ;;  %v1359_v6 = vld [vmem:[%s1867_s1 + $0x58] sm:$0xff] (!%p193_p9)   ;;  %v1361_v8 = vld [vmem:[%s1867_s1 + $0x60] sm:$0xff] (!%p193_p9)   ;;  %v1363_v11 = vld [vmem:[%s1867_s1 + $0x68] sm:$0xff] (!%p193_p9)   ;;  %s1100_s23 = sshll.u32 (!%p193_p9), %s218_s17, 7  ;;  %s1168_s30 = sshll.u32 (!%p193_p9), %s1545_s22, 11 }
  0x10   : > { %1171 = vmatprep.subr.bf16.mxu0 (!%p193_p9), %v1355_v2  ;;  %v1360_v7 = vld [vmem:[%s1867_s1 + $0x18] sm:$0xff] (!%p193_p9)   ;;  %v1362_v9 = vld [vmem:[%s1867_s1 + $0x20] sm:$0xff] (!%p193_p9)   ;;  %v1364_v12 = vld [vmem:[%s1867_s1 + $0x28] sm:$0xff] (!%p193_p9)   ;;  %s1813_s10 = scalar_lea.hbm (!%p193_p9), %s1871_s5, %s1168_s30  ;;  %s1825_s22 = scalar_lea.sflag (!%p193_p9), [#allocation3], %s218_s17 }
  0x11   : > { %v1368_v10 = vld [vmem:[%s1867_s1 + $0x80] sm:$0xff] (!%p193_p9)   ;;  %v1365_v13 = vld [vmem:[%s1867_s1 + $0x70] sm:$0xff] (!%p193_p9)   ;;  %v1373_v15 = vld [vmem:[%s1867_s1 + $0x88] sm:$0xff] (!%p193_p9)   ;;  %s1491_s12 = smov (!%p193_p9), [#allocation2]  }
  0x12   : > { %1259 = vmatprep.subr.bf16.mxu1 (!%p193_p9), %v1368_v10  ;;  %v1366_v18 = vld [vmem:[%s1867_s1 + $0x30] sm:$0xff] (!%p193_p9)   ;;  %v1367_v19 = vld [vmem:[%s1867_s1 + $0x78] sm:$0xff] (!%p193_p9)   ;;  %v1403_v42 = vld [vmem:[%s1869_s3] sm:$0xff] (!%p193_p9)   ;;  %s1431_s13 = sshll.u32 (!%p193_p9), %s1491_s12, 4  ;;  %s1432_s13 = int_to_ptr.vmem [resolvable:$false] %s1431_s13 }
  0x13   : > { %1172 = vmatpush3.bf16.msra.mxu0 (!%p193_p9), %v1356_v3  ;;  %1260 = vmatpush3.bf16.msra.mxu1 (!%p193_p9), %v1368_v10  ;;  %v1369_v21 = vld [vmem:[%s1867_s1 + $0x38] sm:$0xff] (!%p193_p9)   ;;  %v1404_v43 = vld [vmem:[%s1869_s3 + $0x8] sm:$0xff] (!%p193_p9)   ;;  %v1405_v44 = vld [vmem:[%s1869_s3 + $0x10] sm:$0xff] (!%p193_p9)   ;;  %s1433_s14 = scalar_lea.vmem (!%p193_p9), %s1432_s13, 4096 }
  0x14   : > { %1173 = vmatprep.subr.bf16.mxu0 (!%p193_p9), %v1357_v4  ;;  %1261 = vmatprep.subr.bf16.mxu1 (!%p193_p9), %v1373_v15  ;;  %v1406_v45 = vld [vmem:[%s1869_s3 + $0x18] sm:$0xff] (!%p193_p9)   ;;  %v1407_v46 = vld [vmem:[%s1869_s3 + $0x20] sm:$0xff] (!%p193_p9)   ;;  %v1408_v47 = vld [vmem:[%s1869_s3 + $0x28] sm:$0xff] (!%p193_p9)  }
  0x15   : > { %s1879_s7 = smov (!%p222_p10, %s1101_s7), 63  ;;  %v1409_v48 = vld [vmem:[%s1869_s3 + $0x30] sm:$0xff]   ;;  %v1410_v49 = vld [vmem:[%s1869_s3 + $0x38] sm:$0xff]   ;;  %v1693_v58 = vld [vmem:[%s1868_s2] ss:$0 sm:$0xff] }
  0x16   : > { %s1311_s6 = smul.u32 12, %s1879_s7 }
  0x17   : > { %1174 = vmatpush3.bf16.msra.mxu0 %v1358_v5  ;;  %1262 = vmatpush3.bf16.msra.mxu1 %v1373_v15 }
  0x18   : > { %1175 = vmatprep.subr.bf16.mxu0 %v1359_v6  ;;  %s1609_s16 = scalar_lea.vmem %s1866_s0, %s1311_s6  ;;  %1279 = vmatprep.subr.bf16.mxu1 %v1403_v42 }
  0x19   : > { %v1372_v14 = vld [vmem:[%s1609_s16 + $0x4] ss:$12 sps:$4 sm:$0xff]   ;;  %v1374_v16 = vld [vmem:[%s1609_s16 + $0x8] ss:$12 sps:$4 sm:$0xff]   ;;  %v1375_v17 = vld [vmem:[%s1609_s16 + $0x20] ss:$12 sps:$4 sm:$0xff]  }
  0x1a   : > { %594 = vmatprep.mubr.bf16.mxu0 %v1372_v14  ;;  %1263 = vmatprep.mubr.msk.bf16.mxu1 %vm537_vm0, %v1374_v16  ;;  %v1382_v20 = vld [vmem:[%s1609_s16 + $0x38] ss:$12 sps:$4 sm:$0xff]   ;;  %v1370_v22 = vld [vmem:[%s1609_s16] ss:$12 sps:$4 sm:$0xff]   ;;  %v1383_v23 = vld [vmem:[%s1609_s16 + $0x50] ss:$12 sps:$4 sm:$0xff]  }
  0x1b   : > { %1176 = vmatpush3.bf16.msra.mxu0 %v1360_v7  ;;  %1264 = vmatmul.mubr.msk.bf16.vlgmr.msra.gmra.mrb[0].mxu1 %vm537_vm0, %v1375_v17  ;;  %v1390_v24 = vld [vmem:[%s1609_s16 + $0x68] ss:$12 sps:$4 sm:$0xff]   ;;  %v1378_v26 = vld [vmem:[%s1609_s16 + $0x18] ss:$12 sps:$4 sm:$0xff]   ;;  %v1391_v27 = vld [vmem:[%s1609_s16 + $0x80] ss:$12 sps:$4 sm:$0xff]  }
  0x1c   : > { %1177 = vmatprep.subr.bf16.mxu0 %v1361_v8  ;;  %1267 = vmatprep.mubr.msk.bf16.mxu1 %vm537_vm0, %v1382_v20  ;;  %v1376_v25 = vld [vmem:[%s1609_s16 + $0x1c] ss:$12 sps:$4 sm:$0xff]   ;;  %v1398_v28 = vld [vmem:[%s1609_s16 + $0x98] ss:$12 sps:$4 sm:$0xff]   ;;  %v1379_v29 = vld [vmem:[%s1609_s16 + $0x34] ss:$12 sps:$4 sm:$0xff]  }
  0x1d   : > { %v1399_v30 = vld [vmem:[%s1609_s16 + $0xb0] ss:$12 sps:$4 sm:$0xff]   ;;  %v1384_v32 = vld [vmem:[%s1609_s16 + $0x4c] ss:$12 sps:$4 sm:$0xff]   ;;  %v1386_v33 = vld [vmem:[%s1609_s16 + $0x48] ss:$12 sps:$4 sm:$0xff]   ;;  %1280 = vmatpush3.bf16.msra.mxu1 %v1403_v42 }
  0x1e   : > { %v1381_v31 = vld [vmem:[%s1609_s16 + $0x30] ss:$12 sps:$4 sm:$0xff]   ;;  %v1389_v35 = vld [vmem:[%s1609_s16 + $0x60] ss:$12 sps:$4 sm:$0xff]   ;;  %v1394_v37 = vld [vmem:[%s1609_s16 + $0x78] ss:$12 sps:$4 sm:$0xff]   ;;  %1281 = vmatprep.subr.bf16.mxu1 %v1404_v43 }
  0x1f   : > { %1178 = vmatpush3.bf16.msra.mxu0 %v1362_v9  ;;  %v1387_v34 = vld [vmem:[%s1609_s16 + $0x64] ss:$12 sps:$4 sm:$0xff]   ;;  %v1392_v36 = vld [vmem:[%s1609_s16 + $0x7c] ss:$12 sps:$4 sm:$0xff]   ;;  %v1395_v38 = vld [vmem:[%s1609_s16 + $0x94] ss:$12 sps:$4 sm:$0xff]  }
  0x20   : > { %1179 = vmatprep.subr.bf16.mxu0 %v1363_v11  ;;  %v1397_v39 = vld [vmem:[%s1609_s16 + $0x90] ss:$12 sps:$4 sm:$0xff]   ;;  %v1400_v40 = vld [vmem:[%s1609_s16 + $0xac] ss:$12 sps:$4 sm:$0xff]   ;;  %v1402_v41 = vld [vmem:[%s1609_s16 + $0xa8] ss:$12 sps:$4 sm:$0xff]  }
  0x21   : > { %1282 = vmatpush3.bf16.msra.mxu1 %v1404_v43  ;;  %s1780_s16 = scalar_lea.vmem [#allocation2], %s1100_s23 }
  0x22   : > { %1283 = vmatprep.subr.bf16.mxu1 %v1405_v44  ;;  %s1034_s6 = sshll.u32 %s1780_s16, 4  ;;  %s1815_s6 = int_to_ptr.vmem [resolvable:$true] %s1034_s6 }
  0x23   : > { %1180 = vmatpush3.bf16.msra.mxu0 %v1364_v12  ;;  %1268 = vmatmul.mubr.msk.bf16.gmra.mrb[4].mxu1 %vm537_vm0, %v1383_v23  ;;  %s1427_s11 = scalar_lea.vmem %s1815_s6, 2048  ;;  %p1434_p0 = scmp.lt.s32.totalorder %s1815_s6, %s1432_s13 }
  0x24   : > { %1181 = vmatprep.subr.bf16.mxu0 %v1365_v13  ;;  %1271 = vmatprep.mubr.msk.bf16.mxu1 %vm537_vm0, %v1390_v24  ;;  %p1428_p11 = scmp.ne.s32.totalorder %s1815_s6, %s1427_s11  ;;  %p1435_p1 = scmp.lt.s32.totalorder %s1433_s14, %s1427_s11 }
  0x25   : > { %1284 = vmatpush3.bf16.msra.mxu1 %v1405_v44 }
  0x26   : > { %1285 = vmatprep.subr.bf16.mxu1 %v1406_v45  ;;  %p1429_p12 = pnand %p1428_p11, %p1562_p5  ;;  %p1436_p2 = por %p1435_p1, %p1434_p0 }
  0x27   : > { %1182 = vmatpush3.bf16.msra.mxu0 %v1366_v18 }
  0x28   : > { %1183 = vmatprep.subr.bf16.mxu0 %v1367_v19  ;;  %p1430_p13 = pneg %p1429_p12 }
  0x29   : > { %1286 = vmatpush3.bf16.msra.mxu1 %v1406_v45 }
  0x2a   : > { %1287 = vmatprep.subr.bf16.mxu1 %v1407_v46  ;;  %p1437_p3 = pnand %p1436_p2, %p1430_p13 }
  0x2b   : > { %1184 = vmatpush3.bf16.msra.mxu0 %v1369_v21  ;;  %1272 = vmatmul.mubr.msk.bf16.gmra.mrb[8].mxu1 %vm537_vm0, %v1391_v27 }
  0x2c   : > { %1275 = vmatprep.mubr.msk.bf16.mxu1 %vm537_vm0, %v1398_v28 }
  0x2d   : > { %1288 = vmatpush3.bf16.msra.mxu1 %v1407_v46 }
  0x2e   : > { %595 = vmatmul.mubr.bf16.vlgmr.msra.gmra.mrb[0].mxu0 %v1370_v22  ;;  %1289 = vmatprep.subr.bf16.mxu1 %v1408_v47 }
  0x2f   : > { %602 = vmatprep.mubr.bf16.mxu0 %v1376_v25 }
  0x31   : > { %1290 = vmatpush3.bf16.msra.mxu1 %v1408_v47 }
  0x32   : > { %1291 = vmatprep.subr.bf16.mxu1 %v1409_v48 }
  0x33   : > { %1276 = vmatmul.mubr.msk.bf16.gmra.mrb[12].mxu1 %vm537_vm0, %v1399_v30 }
  0x35   : > { %1292 = vmatpush3.bf16.msra.mxu1 %v1409_v48 }
  0x36   : > { %603 = vmatmul.mubr.bf16.gmra.mrb[4].mxu0 %v1378_v26  ;;  %1293 = vmatprep.subr.bf16.mxu1 %v1410_v49 }
  0x37   : > { %610 = vmatprep.mubr.bf16.mxu0 %v1379_v29 }
  0x39   : > { %1294 = vmatpush3.bf16.msra.mxu1 %v1410_v49 }
  0x3e   : > { %611 = vmatmul.mubr.bf16.gmra.mrb[8].mxu0 %v1381_v31 }
  0x3f   : > { %618 = vmatprep.mubr.bf16.mxu0 %v1384_v32 }
  0x46   : > { %619 = vmatmul.mubr.bf16.gmra.mrb[12].mxu0 %v1386_v33 }
  0x47   : > { %626 = vmatprep.mubr.bf16.mxu0 %v1387_v34 }
  0x4e   : > { %627 = vmatmul.mubr.bf16.gmra.mrb[16].mxu0 %v1389_v35 }
  0x4f   : > { %634 = vmatprep.mubr.bf16.mxu0 %v1392_v36 }
  0x56   : > { %635 = vmatmul.mubr.bf16.gmra.mrb[20].mxu0 %v1394_v37 }
  0x57   : > { %642 = vmatprep.mubr.bf16.mxu0 %v1395_v38 }
  0x5e   : > { %643 = vmatmul.mubr.bf16.gmra.mrb[24].mxu0 %v1397_v39 }
  0x5f   : > { %650 = vmatprep.mubr.bf16.mxu0 %v1400_v40 }
  0x66   : > { %651 = vmatmul.mubr.bf16.gmra.mrb[28].mxu0 %v1402_v41 }
  0xee   : > { %v1265_v50 = vpop.f32.mrb[0].mxu1 }
  0xef   : > { %v693_v51 = vpop.f32.mrb[1].mxu1 }
  0xf0   : > { %v1266_v52 = vpop.f32.mrb[2].mxu1 }
  0xf1   : > { %v696_v53 = vpop.f32.mrb[3].mxu1 }
  0xf6   : > { %v1688_v54 = vpop.f32.mrb[4].mxu1 }
  0xf7   : > { %v709_v56 = vpop.f32.mrb[5].mxu1 }
  0xf8   : > { %v1695_v59 = vpop.f32.mrb[6].mxu1 }
  0xf9   : > { %v712_v62 = vpop.f32.mrb[7].mxu1 }
  0xfe   : > { %v1699_v4 = vpop.f32.mrb[8].mxu1 }
  0xff   : > { %v1701_v7 = vpop.f32.mrb[9].mxu1 }
 0x100   : > { %v1703_v9 = vpop.f32.mrb[10].mxu1 }
 0x101   : > { %v1185_v55 = vpop.f32.mrb[0].mxu0  ;;  %v1707_v13 = vpop.f32.mrb[11].mxu1 }
 0x102   : > { %v1186_v57 = vpop.f32.mrb[1].mxu0 }
 0x103   : > { %v1187_v60 = vadd.f32 %v1186_v57, %v1185_v55  ;;  %v1188_v61 = vpop.f32.mrb[2].mxu0 }
 0x104   : > { %v1189_v63 = vpop.f32.mrb[3].mxu0 }
 0x105   : > { %v1190_v0 = vadd.f32 %v1189_v63, %v1188_v61  ;;  %v597_v1 = vadd.f32 %v1187_v60, %v1693_v58 }
 0x106   : > { %v1714_v21 = vpop.f32.mrb[12].mxu1 }
 0x107   : > { %v694_v2 = vadd.f32 %v693_v51, %v597_v1  ;;  %v600_v3 = vadd.f32 %v1190_v0, %v1693_v58  ;;  %v1716_v25 = vpop.f32.mrb[13].mxu1 }
 0x108   : > { %v1718_v27 = vpop.f32.mrb[14].mxu1 }
 0x109   : > { %v697_v5 = vadd.f32 %v696_v53, %v600_v3  ;;  %v1191_v6 = vpop.f32.mrb[4].mxu0  ;;  %v1723_v32 = vpop.f32.mrb[15].mxu1 }
 0x10a   : > { %v1192_v8 = vpop.f32.mrb[5].mxu0 }
 0x10b   : > { %v1705_v10 = vpack.c.bf16 %v697_v5, %v694_v2  ;;  %v1193_v11 = vadd.f32 %v1192_v8, %v1191_v6  ;;  %v1194_v12 = vpop.f32.mrb[6].mxu0 }
 0x10c   : > { %v1195_v14 = vpop.f32.mrb[7].mxu0 }
 0x10d   : > { %v772_v15 = vmul.bf16 %v1705_v10, %v1705_v10  ;;  %v605_v16 = vadd.f32 %v1193_v11, %v1693_v58  ;;  %v1196_v17 = vadd.f32 %v1195_v14, %v1194_v12  ;;  %v764_v1 = vmul.bf16 1056980736, %v1705_v10 }
 0x10f   : > { %v780_v18 = vmul.bf16 %v772_v15, %v1705_v10  ;;  %v702_v19 = vadd.f32 %v1265_v50, %v605_v16  ;;  %v608_v20 = vadd.f32 %v1196_v17, %v1693_v58 }
 0x111   : > { %v788_v22 = vmul.bf16 1027030327, %v780_v18  ;;  %v705_v23 = vadd.f32 %v1266_v52, %v608_v20  ;;  %v1197_v24 = vpop.f32.mrb[8].mxu0 }
 0x112   : > { %v1198_v26 = vpop.f32.mrb[9].mxu0 }
 0x113   : > { %v1720_v28 = vpack.c.bf16 %v705_v23, %v702_v19  ;;  %v1199_v29 = vadd.f32 %v1198_v26, %v1197_v24  ;;  %v1200_v30 = vpop.f32.mrb[10].mxu0  ;;  %v796_v31 = vadd.bf16 %v788_v22, %v1705_v10 }
 0x114   : > { %v1201_v33 = vpop.f32.mrb[11].mxu0 }
 0x115   : > { %v773_v34 = vmul.bf16 %v1720_v28, %v1720_v28  ;;  %v1202_v35 = vadd.f32 %v1201_v33, %v1200_v30  ;;  %v613_v36 = vadd.f32 %v1199_v29, %v1693_v58  ;;  %v804_v37 = vmul.bf16 1061961548, %v796_v31 }
 0x116   : > { %v765_v30 = vmul.bf16 1056980736, %v1720_v28 }
 0x117   : > { %v781_v38 = vmul.bf16 %v773_v34, %v1720_v28  ;;  %v710_v39 = vadd.f32 %v709_v56, %v613_v36  ;;  %v616_v40 = vadd.f32 %v1202_v35, %v1693_v58  ;;  %1411 = vtanh.bf16 %v804_v37 }
 0x119   : > { %v789_v41 = vmul.bf16 1027030327, %v781_v38  ;;  %v713_v42 = vadd.f32 %v712_v62, %v616_v40  ;;  %v1203_v43 = vpop.f32.mrb[12].mxu0 }
 0x11a   : > { %v1204_v44 = vpop.f32.mrb[13].mxu0 }
 0x11b   : > { %v797_v45 = vadd.bf16 %v789_v41, %v1720_v28  ;;  %v1731_v46 = vpack.c.bf16 %v713_v42, %v710_v39  ;;  %v1205_v47 = vadd.f32 %v1204_v44, %v1203_v43  ;;  %v1206_v48 = vpop.f32.mrb[14].mxu0 }
 0x11c   : > { %v1207_v49 = vpop.f32.mrb[15].mxu0 }
 0x11d   : > { %v805_v50 = vmul.bf16 1061961548, %v797_v45  ;;  %v774_v51 = vmul.bf16 %v1731_v46, %v1731_v46  ;;  %v621_v52 = vadd.f32 %v1205_v47, %v1693_v58  ;;  %v1208_v53 = vadd.f32 %v1207_v49, %v1206_v48 }
 0x11e   : > { %v766_v45 = vmul.bf16 1056980736, %v1731_v46 }
 0x11f   : > { %1413 = vtanh.bf16 %v805_v50  ;;  %v782_v55 = vmul.bf16 %v774_v51, %v1731_v46  ;;  %v718_v56 = vadd.f32 %v1688_v54, %v621_v52  ;;  %v624_v57 = vadd.f32 %v1208_v53, %v1693_v58 }
 0x121   : > { %v790_v60 = vmul.bf16 1027030327, %v782_v55  ;;  %v721_v61 = vadd.f32 %v1695_v59, %v624_v57  ;;  %v1209_v62 = vpop.f32.mrb[16].mxu0 }
 0x122   : > { %v1412_v63 = vpop.eup %1411  ;;  %v1210_v0 = vpop.f32.mrb[17].mxu0 }
 0x123   : > { %v1741_v2 = vpack.c.bf16 %v721_v61, %v718_v56  ;;  %v1211_v3 = vadd.f32 %v1210_v0, %v1209_v62  ;;  %v1212_v5 = vpop.f32.mrb[18].mxu0  ;;  %v820_v6 = vadd.bf16 1065369472, %v1412_v63  ;;  %v798_v8 = vadd.bf16 %v790_v60, %v1731_v46 }
 0x124   : > { %v1213_v11 = vpop.f32.mrb[19].mxu0 }
 0x125   : > { %v1214_v12 = vadd.f32 %v1213_v11, %v1212_v5  ;;  %v629_v54 = vadd.f32 %v1211_v3, %v1693_v58  ;;  %v828_v14 = vmul.bf16 %v820_v6, %v764_v1  ;;  %v806_v15 = vmul.bf16 1061961548, %v798_v8 }
 0x126   : > { %v775_v59 = vmul.bf16 %v1741_v2, %v1741_v2  ;;  %v767_v11 = vmul.bf16 1056980736, %v1741_v2 }
 0x127   : > { %v726_v16 = vadd.f32 %v1701_v7, %v629_v54  ;;  %1295 = vmatprep.mubr.bf16.mxu1 %v828_v14  ;;  %v632_v10 = vadd.f32 %v1214_v12, %v1693_v58  ;;  %1415 = vtanh.bf16 %v806_v15 }
 0x128   : > { %v783_v17 = vmul.bf16 %v775_v59, %v1741_v2 }
 0x129   : > { %v729_v18 = vadd.f32 %v1707_v13, %v632_v10  ;;  %v1215_v19 = vpop.f32.mrb[20].mxu0 }
 0x12a   : > { %v1414_v20 = vpop.eup %1413  ;;  %v1216_v22 = vpop.f32.mrb[21].mxu0  ;;  %v791_v23 = vmul.bf16 1027030327, %v783_v17 }
 0x12b   : > { %v1751_v24 = vpack.c.bf16 %v729_v18, %v726_v16  ;;  %v1217_v26 = vadd.f32 %v1216_v22, %v1215_v19  ;;  %v1218_v29 = vpop.f32.mrb[22].mxu0  ;;  %v821_v31 = vadd.bf16 1065369472, %v1414_v20 }
 0x12c   : > { %v1219_v7 = vpop.f32.mrb[23].mxu0  ;;  %v799_v33 = vadd.bf16 %v791_v23, %v1741_v2 }
 0x12d   : > { %v776_v34 = vmul.bf16 %v1751_v24, %v1751_v24  ;;  %v637_v35 = vadd.f32 %v1217_v26, %v1693_v58  ;;  %v1220_v13 = vadd.f32 %v1219_v7, %v1218_v29  ;;  %v829_v36 = vmul.bf16 %v821_v31, %v765_v30 }
 0x12e   : > { %v807_v37 = vmul.bf16 1061961548, %v799_v33  ;;  %v768_v22 = vmul.bf16 1056980736, %v1751_v24 }
 0x12f   : > { %v784_v38 = vmul.bf16 %v776_v34, %v1751_v24  ;;  %v734_v39 = vadd.f32 %v1699_v4, %v637_v35  ;;  %v640_v40 = vadd.f32 %v1220_v13, %v1693_v58  ;;  %1296 = vmatmul.mubr.bf16.vlgmr.msra.gmra.mrb[16].mxu1 %v829_v36 }
 0x130   : > { %1417 = vtanh.bf16 %v807_v37 }
 0x131   : > { %v792_v28 = vmul.bf16 1027030327, %v784_v38  ;;  %v737_v41 = vadd.f32 %v1703_v9, %v640_v40  ;;  %v1221_v42 = vpop.f32.mrb[24].mxu0 }
 0x132   : > { %v1416_v43 = vpop.eup %1415  ;;  %v1222_v44 = vpop.f32.mrb[25].mxu0 }
 0x133   : > { %v761_v47 = vpack.c.bf16 %v737_v41, %v734_v39  ;;  %v1223_v48 = vadd.f32 %v1222_v44, %v1221_v42  ;;  %v1224_v49 = vpop.f32.mrb[26].mxu0  ;;  %v822_v50 = vadd.bf16 1065369472, %v1416_v43  ;;  %v800_v51 = vadd.bf16 %v792_v28, %v1751_v24  ;;  %v1154_v42 = vld [vmem:[%s1870_s4] ss:$0 sm:$0xff] }
 0x134   : > { %v1225_v52 = vpop.f32.mrb[27].mxu0 }
 0x135   : > { %v1226_v4 = vadd.f32 %v1225_v52, %v1224_v49  ;;  %v645_v53 = vadd.f32 %v1223_v48, %v1693_v58  ;;  %v830_v55 = vmul.bf16 %v822_v50, %v766_v45  ;;  %v808_v56 = vmul.bf16 1061961548, %v800_v51 }
 0x136   : > { %v777_v57 = vmul.bf16 %v761_v47, %v761_v47  ;;  %v769_v34 = vmul.bf16 1056980736, %v761_v47 }
 0x137   : > { %v742_v9 = vadd.f32 %v1716_v25, %v645_v53  ;;  %1299 = vmatprep.mubr.bf16.mxu1 %v830_v55  ;;  %v648_v60 = vadd.f32 %v1226_v4, %v1693_v58  ;;  %1419 = vtanh.bf16 %v808_v56 }
 0x138   : > { %v785_v46 = vmul.bf16 %v777_v57, %v761_v47 }
 0x139   : > { %v745_v61 = vadd.f32 %v1723_v32, %v648_v60  ;;  %v1227_v62 = vpop.f32.mrb[28].mxu0 }
 0x13a   : > { %v1228_v63 = vpop.f32.mrb[29].mxu0  ;;  %v793_v0 = vmul.bf16 1027030327, %v785_v46 }
 0x13b   : > { %v1418_v1 = vpop.eup %1417  ;;  %v762_v3 = vpack.c.bf16 %v745_v61, %v742_v9  ;;  %v1229_v5 = vadd.f32 %v1228_v63, %v1227_v62  ;;  %v1230_v6 = vpop.f32.mrb[30].mxu0 }
 0x13c   : > { %v1231_v8 = vpop.f32.mrb[31].mxu0  ;;  %v823_v12 = vadd.bf16 1065369472, %v1418_v1  ;;  %v801_v54 = vadd.bf16 %v793_v0, %v761_v47 }
 0x13d   : > { %v778_v25 = vmul.bf16 %v762_v3, %v762_v3  ;;  %v653_v14 = vadd.f32 %v1229_v5, %v1693_v58  ;;  %v1232_v15 = vadd.f32 %v1231_v8, %v1230_v6  ;;  %v770_v36 = vmul.bf16 1056980736, %v762_v3 }
 0x13e   : > { %v831_v59 = vmul.bf16 %v823_v12, %v767_v11  ;;  %v809_v16 = vmul.bf16 1061961548, %v801_v54 }
 0x13f   : > { %v786_v10 = vmul.bf16 %v778_v25, %v762_v3  ;;  %v750_v32 = vadd.f32 %v1714_v21, %v653_v14  ;;  %v656_v17 = vadd.f32 %v1232_v15, %v1693_v58 }
 0x140   : > { %1300 = vmatmul.mubr.bf16.gmra.mrb[20].mxu1 %v831_v59  ;;  %1421 = vtanh.bf16 %v809_v16 }
 0x141   : > { %v794_v18 = vmul.bf16 1027030327, %v786_v10  ;;  %v753_v19 = vadd.f32 %v1718_v27, %v656_v17 }
 0x142   : > { %v1420_v20 = vpop.eup %1419 }
 0x143   : > { %v763_v2 = vpack.c.bf16 %v753_v19, %v750_v32  ;;  %v824_v23 = vadd.bf16 1065369472, %v1420_v20  ;;  %v802_v26 = vadd.bf16 %v794_v18, %v762_v3 }
 0x145   : > { %v832_v29 = vmul.bf16 %v824_v23, %v768_v22  ;;  %v810_v30 = vmul.bf16 1061961548, %v802_v26  ;;  %v779_v31 = vmul.bf16 %v763_v2, %v763_v2  ;;  %v771_v40 = vmul.bf16 1056980736, %v763_v2 }
 0x147   : > { %1303 = vmatprep.mubr.bf16.mxu1 %v832_v29  ;;  %1423 = vtanh.bf16 %v810_v30  ;;  %v787_v7 = vmul.bf16 %v779_v31, %v763_v2 }
 0x149   : > { %v795_v21 = vmul.bf16 1027030327, %v787_v7 }
 0x14b   : > { %v1422_v33 = vpop.eup %1421  ;;  %v803_v58 = vadd.bf16 %v795_v21, %v763_v2 }
 0x14c   : > { %v825_v35 = vadd.bf16 1065369472, %v1422_v33 }
 0x14d   : > { %v811_v27 = vmul.bf16 1061961548, %v803_v58 }
 0x14e   : > { %v833_v13 = vmul.bf16 %v825_v35, %v769_v34 }
 0x14f   : > { %1425 = vtanh.bf16 %v811_v27 }
 0x150   : > { %1304 = vmatmul.mubr.bf16.gmra.mrb[24].mxu1 %v833_v13 }
 0x152   : > { %v1424_v24 = vpop.eup %1423 }
 0x153   : > { %v826_v37 = vadd.bf16 1065369472, %v1424_v24 }
 0x155   : > { %v834_v38 = vmul.bf16 %v826_v37, %v770_v36 }
 0x157   : > { %1307 = vmatprep.mubr.bf16.mxu1 %v834_v38 }
 0x15a   : > { %v1426_v39 = vpop.eup %1425 }
 0x15b   : > { %v827_v28 = vadd.bf16 1065369472, %v1426_v39 }
 0x15d   : > { %v835_v41 = vmul.bf16 %v827_v28, %v771_v40 }
 0x15f   : > { %1308 = vmatmul.mubr.bf16.gmra.mrb[28].mxu1 %v835_v41 }
 0x202   : > { %v1297_v43 = vpop.f32.mrb[16].mxu1 }
 0x203   : > { %v950_v44 = vadd.f32 %v1297_v43, %v1154_v42  ;;  %v941_v45 = vpop.f32.mrb[17].mxu1 }
 0x204   : > { %v942_v47 = vadd.f32 %v1154_v42, %v941_v45  ;;  %v1298_v48 = vpop.f32.mrb[18].mxu1 }
 0x205   : > { %1006 = vst.msk [vmem:[%s1780_s16 + $0x10] sm:$0xff] %vm537_vm0, %v950_v44  ;;  %v953_v49 = vadd.f32 %v1298_v48, %v1154_v42  ;;  %v944_v50 = vpop.f32.mrb[19].mxu1 }
 0x206   : > { %1004 = vst.msk [vmem:[%s1780_s16] sm:$0xff] %vm537_vm0, %v942_v47  ;;  %v945_v51 = vadd.f32 %v1154_v42, %v944_v50 }
 0x207   : > { %1007 = vst.msk [vmem:[%s1780_s16 + $0x18] sm:$0xff] %vm537_vm0, %v953_v49 }
 0x208   : > { %1005 = vst.msk [vmem:[%s1780_s16 + $0x8] sm:$0xff] %vm537_vm0, %v945_v51 }
 0x213   : > { %v1301_v52 = vpop.f32.mrb[20].mxu1 }
 0x214   : > { %v966_v4 = vadd.f32 %v1301_v52, %v1154_v42  ;;  %v957_v53 = vpop.f32.mrb[21].mxu1 }
 0x215   : > { %v958_v55 = vadd.f32 %v1154_v42, %v957_v53  ;;  %v1302_v56 = vpop.f32.mrb[22].mxu1 }
 0x216   : > { %1010 = vst.msk [vmem:[%s1780_s16 + $0x30] sm:$0xff] %vm537_vm0, %v966_v4  ;;  %v969_v57 = vadd.f32 %v1302_v56, %v1154_v42  ;;  %v960_v9 = vpop.f32.mrb[23].mxu1 }
 0x217   : > { %1008 = vst.msk [vmem:[%s1780_s16 + $0x20] sm:$0xff] %vm537_vm0, %v958_v55  ;;  %v961_v60 = vadd.f32 %v1154_v42, %v960_v9 }
 0x218   : > { %1011 = vst.msk [vmem:[%s1780_s16 + $0x38] sm:$0xff] %vm537_vm0, %v969_v57 }
 0x219   : > { %1009 = vst.msk [vmem:[%s1780_s16 + $0x28] sm:$0xff] %vm537_vm0, %v961_v60 }
 0x223   : > { %v1305_v46 = vpop.f32.mrb[24].mxu1 }
 0x224   : > { %v982_v61 = vadd.f32 %v1305_v46, %v1154_v42  ;;  %v973_v62 = vpop.f32.mrb[25].mxu1 }
 0x225   : > { %v974_v63 = vadd.f32 %v1154_v42, %v973_v62  ;;  %v1306_v0 = vpop.f32.mrb[26].mxu1 }
 0x226   : > { %1014 = vst.msk [vmem:[%s1780_s16 + $0x50] sm:$0xff] %vm537_vm0, %v982_v61  ;;  %v985_v1 = vadd.f32 %v1306_v0, %v1154_v42  ;;  %v976_v3 = vpop.f32.mrb[27].mxu1 }
 0x227   : > { %1012 = vst.msk [vmem:[%s1780_s16 + $0x40] sm:$0xff] %vm537_vm0, %v974_v63  ;;  %v977_v5 = vadd.f32 %v1154_v42, %v976_v3 }
 0x228   : > { %1015 = vst.msk [vmem:[%s1780_s16 + $0x58] sm:$0xff] %vm537_vm0, %v985_v1 }
 0x229   : > { %1013 = vst.msk [vmem:[%s1780_s16 + $0x48] sm:$0xff] %vm537_vm0, %v977_v5 }
 0x232   : > { %v1309_v6 = vpop.f32.mrb[28].mxu1 }
 0x233   : > { %v998_v8 = vadd.f32 %v1309_v6, %v1154_v42  ;;  %v989_v11 = vpop.f32.mrb[29].mxu1 }
 0x234   : > { %v990_v12 = vadd.f32 %v1154_v42, %v989_v11  ;;  %v1310_v54 = vpop.f32.mrb[30].mxu1 }
 0x235   : > { %1018 = vst.msk [vmem:[%s1780_s16 + $0x70] sm:$0xff] %vm537_vm0, %v998_v8  ;;  %v1001_v25 = vadd.f32 %v1310_v54, %v1154_v42  ;;  %v992_v14 = vpop.f32.mrb[31].mxu1 }
 0x236   : > { %1016 = vst.msk [vmem:[%s1780_s16 + $0x60] sm:$0xff] %vm537_vm0, %v990_v12  ;;  %v993_v15 = vadd.f32 %v1154_v42, %v992_v14 }
 0x237   : > { %1019 = vst.msk [vmem:[%s1780_s16 + $0x78] sm:$0xff] %vm537_vm0, %v1001_v25 }
 0x238   : > { %1017 = vst.msk [vmem:[%s1780_s16 + $0x68] sm:$0xff] %vm537_vm0, %v993_v15 }
 0x239   : > { %1440 = shalt.err (!%p1437_p3)
}
 0x23a   : > { %s1441_s15 = scalar_lea.hbm %s1813_s10, 2048  ;;  %s1445_s23 = scalar_lea.hbm %s1871_s5, 8192 }
 0x23b   : > { %p1442_p4 = scmp.ne.s32.totalorder %s1813_s10, %s1441_s15  ;;  %p1446_p9 = scmp.lt.u32.totalorder %s1813_s10, %s1871_s5 }
 0x23c   : > { %p1447_p10 = scmp.lt.u32.totalorder %s1445_s23, %s1441_s15  ;;  %p1449_p12 = scmp.lt.u32.totalorder %s1441_s15, %s1813_s10 }
 0x23d   : > { %p1443_p7 = pnand %p1442_p4, %p1562_p5 }
 0x23e   : > { %p1448_p11 = por %p1447_p10, %p1446_p9 }
 0x23f   : > { %p1444_p8 = pneg %p1443_p7 }
 0x240   : > { %p1450_p13 = por %p1449_p12, %p1448_p11 }
 0x242   : > { %p1451_p0 = pnand %p1450_p13, %p1444_p8 }
 0x244   : > { %1454 = shalt.err (!%p1451_p0)
}
 0x245   : > { %s1492_s16 = smov 128   ;;  %s1493_s30 = smov 8  }
 0x246   : > { %1312 = dma.vmem_to_hbm [thread:$0]  (%p1562_p5), %s1815_s6, 2048, %s1813_s10, %s1825_s22, %s1492_s16, %s1492_s16, %s1493_s30  }
 0x247 PF: > { %p1318_p1 = scmp.ge.s32.totalorder %s1489_s21, 2  ;;  %s1049_s8 = sand.u32 1, %s1477_s18  }
 0x248   : > { %s1050_s9 = scalar_lea.sflag [#allocation3], %s1049_s8 }
 0x249   : > { %p1315_p2 = pnand %p1318_p1, %p1566_p6 }
 0x24b   : > { %1472 = dma.done.wait (!%p1315_p2), %s1050_s9, 2048  }
 0x24c   : > { %1474 = vsyncadd (!%p1315_p2), %s1050_s9, 4294965248  ;;  %p15_p3 = scmp.ge.s32.totalorder %s1549_s24, 6   ;;  %s1874_s18 = smov %s1481_s19 }
 0x24d   : > { %s1875_s19 = smov %s1485_s20  ;;  %s1876_s20 = smov %s1560_s27 }
 0x24e   : > { %s1877_s21 = smov %s1549_s24  ;;  %17 = sbr.rel (!%p15_p3) target bundleno = 3 (0x3), region = 75 }
 0x255   :  { %1055 = vsyncpa [#allocation3], 1 }
 0x256   :  { %1057 = vsyncpa [#allocation3 + $0x1], 1 }

</bundles_post_ra>
